<compile_context>
chip_gen: v6e
topology: v6e:2x2x1
jax: 0.10.0
libtpu: 0.0.40
codegen_flags: <defaults>
</compile_context>

<pallas_src>
import functools

import jax
import jax.numpy as jnp
from jax import lax
from jax.experimental import pallas as pl
from jax.experimental.pallas import tpu as pltpu


_M_CHUNK = 512  # lanes of flattened spatial per matmul chunk (multiple of 128)


# ----------------------------------------------------------------------------
# Pallas kernel: fused Conv3x3 -> PReLU -> Conv3x3 -> PReLU -> Conv3x3 block,
# channels-first with the zero-padded spatial frame flattened on the lane axis.
# ----------------------------------------------------------------------------
def _lpd_conv_block_kernel(x_ref, mask_ref,
                           w1_ref, b1_ref, a1_ref,
                           w2_ref, b2_ref, a2_ref,
                           w3_ref, b3_ref,
                           o_ref, *, wp):
    # x_ref   : (TB, cin, M) bf16  -- zero-padded image frames, M = (H+2)*(W+2)
    # mask_ref: (1, M) f32         -- 1 inside the HxW interior, 0 on the border
    # wK_ref  : (coutK, 9*cinK) bf16 ; bK_ref: (coutK, 1) f32
    # aK_ref  : (1,) f32 in SMEM   -- PReLU slope
    # o_ref   : (TB, cout, M) f32  -- conv output on the padded frame (border
    #                                 masked to 0; the wrapper crops it)
    tb, _, m_total = x_ref.shape
    pad = wp + 1                                    # max |tap offset| on lanes
    offs = [(dy - 1) * wp + (dx - 1) for dy in range(3) for dx in range(3)]
    mask = mask_ref[...]                            # (1, M) f32

    def conv3x3(act, w_ref, b_ref):
        # act: (C, M) bf16 with a zero frame border -> (cout_k, M) f32.
        c = act.shape[0]
        zpad = jnp.zeros((c, pad), act.dtype)
        ext = jnp.concatenate([zpad, act, zpad], axis=1)       # (C, M + 2*pad)
        w = w_ref[...]
        bias = b_ref[...]
        pieces = []
        # Chunk the lane (spatial) axis so the (9C, chunk) im2col operand and
        # the matmul result stay register/VMEM friendly.  Single chunk here.
        for c0 in range(0, m_total, _M_CHUNK):
            cm = min(_M_CHUNK, m_total - c0)
            patches = jnp.concatenate(
                [ext[:, pad + off + c0: pad + off + c0 + cm] for off in offs],
                axis=0)                                        # (9C, cm) bf16
            pieces.append(
                jnp.dot(w, patches, preferred_element_type=jnp.float32) + bias)
        return pieces[0] if len(pieces) == 1 else jnp.concatenate(pieces, axis=1)

    def prelu(y, a_ref):
        a = a_ref[0]                                 # scalar slope from SMEM
        return jnp.where(y >= 0, y, a * y)

    for b in range(tb):                              # tb <= 2, static unroll
        h = x_ref[b]                                             # (cin, M) bf16
        h = (prelu(conv3x3(h, w1_ref, b1_ref), a1_ref) * mask
             ).astype(jnp.bfloat16)
        h = (prelu(conv3x3(h, w2_ref, b2_ref), a2_ref) * mask
             ).astype(jnp.bfloat16)
        y = conv3x3(h, w3_ref, b3_ref) * mask                    # (cout, M) f32
        o_ref[b] = y.astype(o_ref.dtype)


def _pick_tile_batch(batch, min_steps=4, max_tb=4):
    """Largest divisor tb of `batch` giving >= min_steps grid steps (>= 2 per
    v7x TensorCore for DMA/compute overlap); tb=1 when batch is too small."""
    for tb in range(min(batch, max_tb), 0, -1):
        if batch % tb == 0 and batch // tb >= min_steps:
            return tb
    return 1


def _vmem_limit_bytes():
    """~96 MiB on 128 MiB chips (v5e/v6e), ~48 MiB on 64 MiB chips (v7x)."""
    try:
        cap = int(pltpu.get_tpu_info().vmem_capacity_bytes)
    except Exception:
        cap = 64 * 1024 * 1024
    return min(100 * 1024 * 1024, cap * 3 // 4)


def prep_block_params(params):
    """Re-layout conv params for the kernel: weights -> (cout, 9*cin) bf16 with
    K ordered tap-major / channel-minor; biases -> (cout, 1) f32 columns."""
    w1, b1, a1, w2, b2, a2, w3, b3 = params

    def flat_t(w):                                   # HWIO (3, 3, ci, co)
        kh, kw, ci, co = w.shape
        return (jnp.transpose(w, (3, 0, 1, 2))
                .reshape(co, kh * kw * ci).astype(jnp.bfloat16))

    def col(b):                                      # (1, co) -> (co, 1)
        return b.reshape(-1, 1).astype(jnp.float32)

    return (flat_t(w1), col(b1), a1, flat_t(w2), col(b2), a2, flat_t(w3), col(b3))


def conv_prelu_block(x, prepped):
    """Apply the fused 3-layer conv/PReLU block to a batch of NHWC images."""
    w1r, b1, a1, w2r, b2, a2, w3r, b3 = prepped
    B, H, W, cin = x.shape
    nh = w1r.shape[0]
    cout = w3r.shape[0]
    assert w1r.shape[1] == 9 * cin and w2r.shape[1] == 9 * nh
    Hp, Wp, M = H + 2, W + 2, (H + 2) * (W + 2)

    # Channels-first, zero-padded, lane-flattened frames (1x image bytes).
    xp = jnp.pad(x, ((0, 0), (1, 1), (1, 1), (0, 0)))
    xcf = (jnp.transpose(xp, (0, 3, 1, 2))
           .reshape(B, cin, M).astype(jnp.bfloat16))

    # Interior mask of the padded frame (constant input, DMA'd once).
    row_idx = jnp.arange(Hp)[:, None]
    col_idx = jnp.arange(Wp)[None, :]
    mask = (((row_idx >= 1) & (row_idx <= H) & (col_idx >= 1) & (col_idx <= W))
            .reshape(1, M).astype(jnp.float32))

    tb = _pick_tile_batch(B)
    full = lambda shape: pl.BlockSpec(shape, lambda b: (0,) * len(shape))
    smem = pl.BlockSpec(memory_space=pltpu.MemorySpace.SMEM)

    out = pl.pallas_call(
        functools.partial(_lpd_conv_block_kernel, wp=Wp),
        out_shape=jax.ShapeDtypeStruct((B, cout, M), jnp.float32),
        grid_spec=pltpu.PrefetchScalarGridSpec(
            num_scalar_prefetch=0,
            grid=(B // tb,),
            in_specs=[
                pl.BlockSpec((tb, cin, M), lambda b: (b, 0, 0)),
                full((1, M)),
                full((nh, 9 * cin)), full((nh, 1)), smem,
                full((nh, 9 * nh)), full((nh, 1)), smem,
                full((cout, 9 * nh)), full((cout, 1)),
            ],
            out_specs=pl.BlockSpec((tb, cout, M), lambda b: (b, 0, 0)),
        ),
        compiler_params=pltpu.CompilerParams(
            dimension_semantics=("parallel",),
            vmem_limit_bytes=_vmem_limit_bytes()),
    )(xcf, mask, w1r, b1, a1, w2r, b2, a2, w3r, b3)

    # Crop the padded frame and go back to NHWC.
    out = out.reshape(B, cout, Hp, Wp)[:, :, 1:1 + H, 1:1 + W]
    return jnp.transpose(out, (0, 2, 3, 1))


# Pure-JAX reference of the same block (f32), used only for a sanity check.
def conv_prelu_block_ref(x, params):
    w1, b1, a1, w2, b2, a2, w3, b3 = params

    def conv(v, w, b):
        return lax.conv_general_dilated(
            v, w, window_strides=(1, 1), padding="SAME",
            dimension_numbers=("NHWC", "HWIO", "NHWC")) + b[0]

    y = conv(x, w1, b1)
    y = jnp.where(y >= 0, y, a1[0] * y)
    y = conv(y, w2, b2)
    y = jnp.where(y >= 0, y, a2[0] * y)
    return conv(y, w3, b3)


# ----------------------------------------------------------------------------
# Plain-JAX glue: FFT operators, sensitivity expand/reduce (complex-as-last-2).
# ----------------------------------------------------------------------------
def _to_complex(x):
    return x[..., 0] + 1j * x[..., 1]


def _to_real(z, dtype):
    return jnp.stack([z.real, z.imag], axis=-1).astype(dtype)


def fft2c(x, dim=(2, 3)):
    z = _to_complex(x)
    z = jnp.fft.ifftshift(z, axes=dim)
    z = jnp.fft.fftn(z, axes=dim, norm="ortho")
    z = jnp.fft.fftshift(z, axes=dim)
    return _to_real(z, x.dtype)


def ifft2c(x, dim=(2, 3)):
    z = _to_complex(x)
    z = jnp.fft.ifftshift(z, axes=dim)
    z = jnp.fft.ifftn(z, axes=dim, norm="ortho")
    z = jnp.fft.fftshift(z, axes=dim)
    return _to_real(z, x.dtype)


def complex_mul(a, b):
    re = a[..., 0] * b[..., 0] - a[..., 1] * b[..., 1]
    im = a[..., 0] * b[..., 1] + a[..., 1] * b[..., 0]
    return jnp.stack([re, im], axis=-1)


def expand_operator(image, sens, coil_dim=1):
    # image: (N, H, W, 2) -> (N, coil, H, W, 2)
    return complex_mul(sens, jnp.expand_dims(image, coil_dim))


def reduce_operator(coil_images, sens, coil_dim=1):
    conj_sens = jnp.stack([sens[..., 0], -sens[..., 1]], axis=-1)
    return jnp.sum(complex_mul(conj_sens, coil_images), axis=coil_dim)


def _forward_op(image, sampling_mask, sens):
    k = fft2c(expand_operator(image, sens))
    return jnp.where(sampling_mask == 0, jnp.zeros((), image.dtype), k)


def _backward_op(kspace, sampling_mask, sens):
    masked = jnp.where(sampling_mask == 0, jnp.zeros((), kspace.dtype), kspace)
    return reduce_operator(ifft2c(masked), sens)


# ----------------------------------------------------------------------------
# LPDNet forward
# ----------------------------------------------------------------------------
def lpd_forward(masked_kspace, sensitivity_map, sampling_mask,
                primal_params, dual_params, num_iter, num_primal, num_dual):
    N, C, H, W, _ = masked_kspace.shape

    primal_prepped = prep_block_params(primal_params)
    dual_prepped = prep_block_params(dual_params)

    input_image = _backward_op(masked_kspace, sampling_mask, sensitivity_map)
    dual_buffer = jnp.concatenate([masked_kspace] * num_dual, axis=-1)
    primal_buffer = jnp.concatenate([input_image] * num_primal, axis=-1)

    for _ in range(num_iter):
        # ---- dual update (per-coil conv block, coils folded into batch) ----
        f_2 = primal_buffer[..., 2:4]
        fwd = _forward_op(f_2, sampling_mask, sensitivity_map)
        dual_in = jnp.concatenate([dual_buffer, fwd, masked_kspace], axis=-1)
        cin_d = dual_in.shape[-1]
        dual_out = conv_prelu_block(
            dual_in.reshape(N * C, H, W, cin_d), dual_prepped)
        dual_buffer = dual_out.reshape(N, C, H, W, 2 * num_dual)

        # ---- primal update ----
        h_1 = dual_buffer[..., 0:2]
        bwd = _backward_op(h_1, sampling_mask, sensitivity_map)
        primal_in = jnp.concatenate([primal_buffer, bwd], axis=-1)
        primal_buffer = conv_prelu_block(primal_in, primal_prepped)

    return primal_buffer[..., 0:2]


# ----------------------------------------------------------------------------
# Deterministic parameter init (synthetic; matches __init__ shapes)
# ----------------------------------------------------------------------------
def init_block_params(key, cin, n_hidden, cout):
    ks = jax.random.split(key, 6)

    def conv_w(k, ci, co):
        return (jax.random.normal(k, (3, 3, ci, co), jnp.float32)
                * (1.0 / jnp.sqrt(9.0 * ci)))

    w1 = conv_w(ks[0], cin, n_hidden)
    b1 = jax.random.normal(ks[1], (1, n_hidden), jnp.float32) * 0.01
    a1 = jnp.array([0.25], jnp.float32)                 # PReLU default init
    w2 = conv_w(ks[2], n_hidden, n_hidden)
    b2 = jax.random.normal(ks[3], (1, n_hidden), jnp.float32) * 0.01
    a2 = jnp.array([0.25], jnp.float32)
    w3 = conv_w(ks[4], n_hidden, cout)
    b3 = jax.random.normal(ks[5], (1, cout), jnp.float32) * 0.01
    return (w1, b1, a1, w2, b2, a2, w3, b3)


if __name__ == "__main__":
    # Small deterministic problem
    N, COIL, H, W = 2, 4, 16, 16
    NUM_ITER, NUM_PRIMAL, NUM_DUAL, N_HIDDEN = 2, 2, 2, 16

    key = jax.random.PRNGKey(0)
    k_ksp, k_sens, k_mask, k_pp, k_dp, k_chk = jax.random.split(key, 6)

    masked_kspace = jax.random.normal(k_ksp, (N, COIL, H, W, 2), jnp.float32)
    sensitivity_map = jax.random.normal(k_sens, (N, COIL, H, W, 2), jnp.float32)
    sampling_mask = (jax.random.uniform(k_mask, (N, 1, H, W, 1)) > 0.4
                     ).astype(jnp.float32)
    masked_kspace = jnp.where(sampling_mask == 0, 0.0, masked_kspace)

    # One primal model and one dual model, shared across unrolled iterations
    # (matches LPDNet, which wraps the same instance in every PrimalNet/DualNet).
    primal_params = init_block_params(
        k_pp, 2 * (NUM_PRIMAL + 1), N_HIDDEN, 2 * NUM_PRIMAL)
    dual_params = init_block_params(
        k_dp, 2 * (NUM_DUAL + 2), N_HIDDEN, 2 * NUM_DUAL)

    # --- conv-block sanity check: Pallas (bf16 matmuls) vs plain-JAX f32 ---
    x_chk = jax.random.normal(
        k_chk, (N * COIL, H, W, 2 * (NUM_DUAL + 2)), jnp.float32)
    y_pal = jax.jit(conv_prelu_block)(x_chk, prep_block_params(dual_params))
    y_pal = jax.block_until_ready(y_pal)
    y_ref = conv_prelu_block_ref(x_chk, dual_params)
    rel = jnp.linalg.norm(y_pal - y_ref) / (jnp.linalg.norm(y_ref) + 1e-12)
    assert float(rel) < 3e-2, f"conv block mismatch: rel={float(rel)}"

    fwd = jax.jit(functools.partial(
        lpd_forward,
        num_iter=NUM_ITER, num_primal=NUM_PRIMAL, num_dual=NUM_DUAL))

    out = fwd(masked_kspace, sensitivity_map, sampling_mask,
              primal_params, dual_params)
    out = jax.block_until_ready(out)

    assert out.shape == (N, H, W, 2), out.shape
    assert out.dtype == jnp.float32
    assert bool(jnp.all(jnp.isfinite(out)))
    print("KERNEL_OK")
</pallas_src>

<mosaic_0001>
module attributes {stable_mosaic.version = 11 : i64} {
  func.func @_lpd_conv_block_kernel(%arg0: i32, %arg1: memref<2x8x324xbf16, #tpu.memory_space<vmem>>, %arg2: memref<1x324xf32, #tpu.memory_space<vmem>>, %arg3: memref<16x72xbf16, #tpu.memory_space<vmem>>, %arg4: memref<16x1xf32, #tpu.memory_space<vmem>>, %arg5: memref<1xf32, #tpu.memory_space<smem>>, %arg6: memref<16x144xbf16, #tpu.memory_space<vmem>>, %arg7: memref<16x1xf32, #tpu.memory_space<vmem>>, %arg8: memref<1xf32, #tpu.memory_space<smem>>, %arg9: memref<4x144xbf16, #tpu.memory_space<vmem>>, %arg10: memref<4x1xf32, #tpu.memory_space<vmem>>, %arg11: memref<2x4x324xf32, #tpu.memory_space<vmem>>) attributes {dimension_semantics = [#tpu.dimension_semantics<parallel>], iteration_bounds = array<i64: 4>, scalar_prefetch = 0 : i64, scratch_operands = 0 : i64, tpu.core_type = #tpu.core_type<tc>, window_params = [{transform_indices = @transform_0, window_bounds = array<i64: 2, 8, 324>}, {pipeline_mode = #tpu.pipeline_mode<synchronous>, transform_indices = @transform_1, window_bounds = array<i64: 1, 324>}, {pipeline_mode = #tpu.pipeline_mode<synchronous>, transform_indices = @transform_2, window_bounds = array<i64: 16, 72>}, {pipeline_mode = #tpu.pipeline_mode<synchronous>, transform_indices = @transform_3, window_bounds = array<i64: 16, 1>}, {transform_indices = @transform_4, window_bounds = array<i64: 1>}, {pipeline_mode = #tpu.pipeline_mode<synchronous>, transform_indices = @transform_5, window_bounds = array<i64: 16, 144>}, {pipeline_mode = #tpu.pipeline_mode<synchronous>, transform_indices = @transform_6, window_bounds = array<i64: 16, 1>}, {transform_indices = @transform_7, window_bounds = array<i64: 1>}, {pipeline_mode = #tpu.pipeline_mode<synchronous>, transform_indices = @transform_8, window_bounds = array<i64: 4, 144>}, {pipeline_mode = #tpu.pipeline_mode<synchronous>, transform_indices = @transform_9, window_bounds = array<i64: 4, 1>}, {transform_indices = @transform_10, window_bounds = array<i64: 2, 4, 324>}]} {
    %c0 = arith.constant 0 : index
    %c0_0 = arith.constant 0 : index
    %0 = vector.load %arg2[%c0, %c0_0] : memref<1x324xf32, #tpu.memory_space<vmem>>, vector<1x324xf32>
    %c0_1 = arith.constant 0 : index
    %c0_2 = arith.constant 0 : index
    %c0_3 = arith.constant 0 : index
    %1 = vector.load %arg1[%c0_1, %c0_2, %c0_3] : memref<2x8x324xbf16, #tpu.memory_space<vmem>>, vector<1x8x324xbf16>
    %2 = vector.shape_cast %1 : vector<1x8x324xbf16> to vector<8x324xbf16>
    %cst = arith.constant 0.000000e+00 : bf16
    %3 = vector.broadcast %cst : bf16 to vector<8x19xbf16>
    %4 = tpu.concatenate %3, %2, %3 in 1 : vector<8x19xbf16>, vector<8x324xbf16>, vector<8x19xbf16> -> vector<8x362xbf16>
    %c0_4 = arith.constant 0 : index
    %c0_5 = arith.constant 0 : index
    %5 = vector.load %arg3[%c0_4, %c0_5] : memref<16x72xbf16, #tpu.memory_space<vmem>>, vector<16x72xbf16>
    %c0_6 = arith.constant 0 : index
    %c0_7 = arith.constant 0 : index
    %6 = vector.load %arg4[%c0_6, %c0_7] : memref<16x1xf32, #tpu.memory_space<vmem>>, vector<16x1xf32>
    %7 = vector.extract_strided_slice %4 {offsets = [0, 0], sizes = [8, 324], strides = [1, 1]} : vector<8x362xbf16> to vector<8x324xbf16>
    %8 = vector.extract_strided_slice %4 {offsets = [0, 1], sizes = [8, 324], strides = [1, 1]} : vector<8x362xbf16> to vector<8x324xbf16>
    %9 = vector.extract_strided_slice %4 {offsets = [0, 2], sizes = [8, 324], strides = [1, 1]} : vector<8x362xbf16> to vector<8x324xbf16>
    %10 = vector.extract_strided_slice %4 {offsets = [0, 18], sizes = [8, 324], strides = [1, 1]} : vector<8x362xbf16> to vector<8x324xbf16>
    %11 = vector.extract_strided_slice %4 {offsets = [0, 19], sizes = [8, 324], strides = [1, 1]} : vector<8x362xbf16> to vector<8x324xbf16>
    %12 = vector.extract_strided_slice %4 {offsets = [0, 20], sizes = [8, 324], strides = [1, 1]} : vector<8x362xbf16> to vector<8x324xbf16>
    %13 = vector.extract_strided_slice %4 {offsets = [0, 36], sizes = [8, 324], strides = [1, 1]} : vector<8x362xbf16> to vector<8x324xbf16>
    %14 = vector.extract_strided_slice %4 {offsets = [0, 37], sizes = [8, 324], strides = [1, 1]} : vector<8x362xbf16> to vector<8x324xbf16>
    %15 = vector.extract_strided_slice %4 {offsets = [0, 38], sizes = [8, 324], strides = [1, 1]} : vector<8x362xbf16> to vector<8x324xbf16>
    %16 = tpu.concatenate %7, %8, %9, %10, %11, %12, %13, %14, %15 in 0 : vector<8x324xbf16>, vector<8x324xbf16>, vector<8x324xbf16>, vector<8x324xbf16>, vector<8x324xbf16>, vector<8x324xbf16>, vector<8x324xbf16>, vector<8x324xbf16>, vector<8x324xbf16> -> vector<72x324xbf16>
    %cst_8 = arith.constant dense<0.000000e+00> : vector<16x324xf32>
    %17 = tpu.matmul %5, %16, %cst_8 {dimension_numbers = #tpu.dot_dimension_numbers<[1], [0], [0], [1], [0, 0, 1, 1], [], []>} : vector<16x72xbf16>, vector<72x324xbf16>, vector<16x324xf32> -> vector<16x324xf32>
    %18 = vector.broadcast %6 : vector<16x1xf32> to vector<16x324xf32>
    %19 = arith.addf %17, %18 : vector<16x324xf32>
    %c0_9 = arith.constant 0 : index
    %20 = memref.load %arg5[%c0_9] : memref<1xf32, #tpu.memory_space<smem>>
    %cst_10 = arith.constant 0.000000e+00 : f32
    %21 = vector.broadcast %cst_10 : f32 to vector<16x324xf32>
    %22 = arith.cmpf oge, %19, %21 : vector<16x324xf32>
    %23 = vector.broadcast %20 : f32 to vector<16x324xf32>
    %24 = arith.mulf %23, %19 : vector<16x324xf32>
    %25 = arith.select %22, %19, %24 : vector<16x324xi1>, vector<16x324xf32>
    %26 = vector.broadcast %0 : vector<1x324xf32> to vector<16x324xf32>
    %27 = arith.mulf %25, %26 : vector<16x324xf32>
    %28 = arith.truncf %27 : vector<16x324xf32> to vector<16x324xbf16>
    %cst_11 = arith.constant 0.000000e+00 : bf16
    %29 = vector.broadcast %cst_11 : bf16 to vector<16x19xbf16>
    %30 = tpu.concatenate %29, %28, %29 in 1 : vector<16x19xbf16>, vector<16x324xbf16>, vector<16x19xbf16> -> vector<16x362xbf16>
    %c0_12 = arith.constant 0 : index
    %c0_13 = arith.constant 0 : index
    %31 = vector.load %arg6[%c0_12, %c0_13] : memref<16x144xbf16, #tpu.memory_space<vmem>>, vector<16x144xbf16>
    %c0_14 = arith.constant 0 : index
    %c0_15 = arith.constant 0 : index
    %32 = vector.load %arg7[%c0_14, %c0_15] : memref<16x1xf32, #tpu.memory_space<vmem>>, vector<16x1xf32>
    %33 = vector.extract_strided_slice %30 {offsets = [0, 0], sizes = [16, 324], strides = [1, 1]} : vector<16x362xbf16> to vector<16x324xbf16>
    %34 = vector.extract_strided_slice %30 {offsets = [0, 1], sizes = [16, 324], strides = [1, 1]} : vector<16x362xbf16> to vector<16x324xbf16>
    %35 = vector.extract_strided_slice %30 {offsets = [0, 2], sizes = [16, 324], strides = [1, 1]} : vector<16x362xbf16> to vector<16x324xbf16>
    %36 = vector.extract_strided_slice %30 {offsets = [0, 18], sizes = [16, 324], strides = [1, 1]} : vector<16x362xbf16> to vector<16x324xbf16>
    %37 = vector.extract_strided_slice %30 {offsets = [0, 19], sizes = [16, 324], strides = [1, 1]} : vector<16x362xbf16> to vector<16x324xbf16>
    %38 = vector.extract_strided_slice %30 {offsets = [0, 20], sizes = [16, 324], strides = [1, 1]} : vector<16x362xbf16> to vector<16x324xbf16>
    %39 = vector.extract_strided_slice %30 {offsets = [0, 36], sizes = [16, 324], strides = [1, 1]} : vector<16x362xbf16> to vector<16x324xbf16>
    %40 = vector.extract_strided_slice %30 {offsets = [0, 37], sizes = [16, 324], strides = [1, 1]} : vector<16x362xbf16> to vector<16x324xbf16>
    %41 = vector.extract_strided_slice %30 {offsets = [0, 38], sizes = [16, 324], strides = [1, 1]} : vector<16x362xbf16> to vector<16x324xbf16>
    %42 = tpu.concatenate %33, %34, %35, %36, %37, %38, %39, %40, %41 in 0 : vector<16x324xbf16>, vector<16x324xbf16>, vector<16x324xbf16>, vector<16x324xbf16>, vector<16x324xbf16>, vector<16x324xbf16>, vector<16x324xbf16>, vector<16x324xbf16>, vector<16x324xbf16> -> vector<144x324xbf16>
    %cst_16 = arith.constant dense<0.000000e+00> : vector<16x324xf32>
    %43 = tpu.matmul %31, %42, %cst_16 {dimension_numbers = #tpu.dot_dimension_numbers<[1], [0], [0], [1], [0, 0, 1, 1], [], []>} : vector<16x144xbf16>, vector<144x324xbf16>, vector<16x324xf32> -> vector<16x324xf32>
    %44 = vector.broadcast %32 : vector<16x1xf32> to vector<16x324xf32>
    %45 = arith.addf %43, %44 : vector<16x324xf32>
    %c0_17 = arith.constant 0 : index
    %46 = memref.load %arg8[%c0_17] : memref<1xf32, #tpu.memory_space<smem>>
    %cst_18 = arith.constant 0.000000e+00 : f32
    %47 = vector.broadcast %cst_18 : f32 to vector<16x324xf32>
    %48 = arith.cmpf oge, %45, %47 : vector<16x324xf32>
    %49 = vector.broadcast %46 : f32 to vector<16x324xf32>
    %50 = arith.mulf %49, %45 : vector<16x324xf32>
    %51 = arith.select %48, %45, %50 : vector<16x324xi1>, vector<16x324xf32>
    %52 = vector.broadcast %0 : vector<1x324xf32> to vector<16x324xf32>
    %53 = arith.mulf %51, %52 : vector<16x324xf32>
    %54 = arith.truncf %53 : vector<16x324xf32> to vector<16x324xbf16>
    %cst_19 = arith.constant 0.000000e+00 : bf16
    %55 = vector.broadcast %cst_19 : bf16 to vector<16x19xbf16>
    %56 = tpu.concatenate %55, %54, %55 in 1 : vector<16x19xbf16>, vector<16x324xbf16>, vector<16x19xbf16> -> vector<16x362xbf16>
    %c0_20 = arith.constant 0 : index
    %c0_21 = arith.constant 0 : index
    %57 = vector.load %arg9[%c0_20, %c0_21] : memref<4x144xbf16, #tpu.memory_space<vmem>>, vector<4x144xbf16>
    %c0_22 = arith.constant 0 : index
    %c0_23 = arith.constant 0 : index
    %58 = vector.load %arg10[%c0_22, %c0_23] : memref<4x1xf32, #tpu.memory_space<vmem>>, vector<4x1xf32>
    %59 = vector.extract_strided_slice %56 {offsets = [0, 0], sizes = [16, 324], strides = [1, 1]} : vector<16x362xbf16> to vector<16x324xbf16>
    %60 = vector.extract_strided_slice %56 {offsets = [0, 1], sizes = [16, 324], strides = [1, 1]} : vector<16x362xbf16> to vector<16x324xbf16>
    %61 = vector.extract_strided_slice %56 {offsets = [0, 2], sizes = [16, 324], strides = [1, 1]} : vector<16x362xbf16> to vector<16x324xbf16>
    %62 = vector.extract_strided_slice %56 {offsets = [0, 18], sizes = [16, 324], strides = [1, 1]} : vector<16x362xbf16> to vector<16x324xbf16>
    %63 = vector.extract_strided_slice %56 {offsets = [0, 19], sizes = [16, 324], strides = [1, 1]} : vector<16x362xbf16> to vector<16x324xbf16>
    %64 = vector.extract_strided_slice %56 {offsets = [0, 20], sizes = [16, 324], strides = [1, 1]} : vector<16x362xbf16> to vector<16x324xbf16>
    %65 = vector.extract_strided_slice %56 {offsets = [0, 36], sizes = [16, 324], strides = [1, 1]} : vector<16x362xbf16> to vector<16x324xbf16>
    %66 = vector.extract_strided_slice %56 {offsets = [0, 37], sizes = [16, 324], strides = [1, 1]} : vector<16x362xbf16> to vector<16x324xbf16>
    %67 = vector.extract_strided_slice %56 {offsets = [0, 38], sizes = [16, 324], strides = [1, 1]} : vector<16x362xbf16> to vector<16x324xbf16>
    %68 = tpu.concatenate %59, %60, %61, %62, %63, %64, %65, %66, %67 in 0 : vector<16x324xbf16>, vector<16x324xbf16>, vector<16x324xbf16>, vector<16x324xbf16>, vector<16x324xbf16>, vector<16x324xbf16>, vector<16x324xbf16>, vector<16x324xbf16>, vector<16x324xbf16> -> vector<144x324xbf16>
    %cst_24 = arith.constant dense<0.000000e+00> : vector<4x324xf32>
    %69 = tpu.matmul %57, %68, %cst_24 {dimension_numbers = #tpu.dot_dimension_numbers<[1], [0], [0], [1], [0, 0, 1, 1], [], []>} : vector<4x144xbf16>, vector<144x324xbf16>, vector<4x324xf32> -> vector<4x324xf32>
    %70 = vector.broadcast %58 : vector<4x1xf32> to vector<4x324xf32>
    %71 = arith.addf %69, %70 : vector<4x324xf32>
    %72 = vector.broadcast %0 : vector<1x324xf32> to vector<4x324xf32>
    %73 = arith.mulf %71, %72 : vector<4x324xf32>
    %c0_25 = arith.constant 0 : index
    %c0_26 = arith.constant 0 : index
    %c0_27 = arith.constant 0 : index
    %74 = vector.load %arg11[%c0_25, %c0_26, %c0_27] : memref<2x4x324xf32, #tpu.memory_space<vmem>>, vector<1x4x324xf32>
    %75 = vector.shape_cast %74 : vector<1x4x324xf32> to vector<4x324xf32>
    %76 = vector.shape_cast %73 : vector<4x324xf32> to vector<1x4x324xf32>
    tpu.vector_store %arg11[%c0_25, %c0_26, %c0_27], %76 {strides = array<i32>} : memref<2x4x324xf32, #tpu.memory_space<vmem>>, vector<1x4x324xf32>,
    %c1 = arith.constant 1 : index
    %c0_28 = arith.constant 0 : index
    %c0_29 = arith.constant 0 : index
    %77 = vector.load %arg1[%c1, %c0_28, %c0_29] : memref<2x8x324xbf16, #tpu.memory_space<vmem>>, vector<1x8x324xbf16>
    %78 = vector.shape_cast %77 : vector<1x8x324xbf16> to vector<8x324xbf16>
    %cst_30 = arith.constant 0.000000e+00 : bf16
    %79 = vector.broadcast %cst_30 : bf16 to vector<8x19xbf16>
    %80 = tpu.concatenate %79, %78, %79 in 1 : vector<8x19xbf16>, vector<8x324xbf16>, vector<8x19xbf16> -> vector<8x362xbf16>
    %c0_31 = arith.constant 0 : index
    %c0_32 = arith.constant 0 : index
    %81 = vector.load %arg3[%c0_31, %c0_32] : memref<16x72xbf16, #tpu.memory_space<vmem>>, vector<16x72xbf16>
    %c0_33 = arith.constant 0 : index
    %c0_34 = arith.constant 0 : index
    %82 = vector.load %arg4[%c0_33, %c0_34] : memref<16x1xf32, #tpu.memory_space<vmem>>, vector<16x1xf32>
    %83 = vector.extract_strided_slice %80 {offsets = [0, 0], sizes = [8, 324], strides = [1, 1]} : vector<8x362xbf16> to vector<8x324xbf16>
    %84 = vector.extract_strided_slice %80 {offsets = [0, 1], sizes = [8, 324], strides = [1, 1]} : vector<8x362xbf16> to vector<8x324xbf16>
    %85 = vector.extract_strided_slice %80 {offsets = [0, 2], sizes = [8, 324], strides = [1, 1]} : vector<8x362xbf16> to vector<8x324xbf16>
    %86 = vector.extract_strided_slice %80 {offsets = [0, 18], sizes = [8, 324], strides = [1, 1]} : vector<8x362xbf16> to vector<8x324xbf16>
    %87 = vector.extract_strided_slice %80 {offsets = [0, 19], sizes = [8, 324], strides = [1, 1]} : vector<8x362xbf16> to vector<8x324xbf16>
    %88 = vector.extract_strided_slice %80 {offsets = [0, 20], sizes = [8, 324], strides = [1, 1]} : vector<8x362xbf16> to vector<8x324xbf16>
    %89 = vector.extract_strided_slice %80 {offsets = [0, 36], sizes = [8, 324], strides = [1, 1]} : vector<8x362xbf16> to vector<8x324xbf16>
    %90 = vector.extract_strided_slice %80 {offsets = [0, 37], sizes = [8, 324], strides = [1, 1]} : vector<8x362xbf16> to vector<8x324xbf16>
    %91 = vector.extract_strided_slice %80 {offsets = [0, 38], sizes = [8, 324], strides = [1, 1]} : vector<8x362xbf16> to vector<8x324xbf16>
    %92 = tpu.concatenate %83, %84, %85, %86, %87, %88, %89, %90, %91 in 0 : vector<8x324xbf16>, vector<8x324xbf16>, vector<8x324xbf16>, vector<8x324xbf16>, vector<8x324xbf16>, vector<8x324xbf16>, vector<8x324xbf16>, vector<8x324xbf16>, vector<8x324xbf16> -> vector<72x324xbf16>
    %cst_35 = arith.constant dense<0.000000e+00> : vector<16x324xf32>
    %93 = tpu.matmul %81, %92, %cst_35 {dimension_numbers = #tpu.dot_dimension_numbers<[1], [0], [0], [1], [0, 0, 1, 1], [], []>} : vector<16x72xbf16>, vector<72x324xbf16>, vector<16x324xf32> -> vector<16x324xf32>
    %94 = vector.broadcast %82 : vector<16x1xf32> to vector<16x324xf32>
    %95 = arith.addf %93, %94 : vector<16x324xf32>
    %c0_36 = arith.constant 0 : index
    %96 = memref.load %arg5[%c0_36] : memref<1xf32, #tpu.memory_space<smem>>
    %cst_37 = arith.constant 0.000000e+00 : f32
    %97 = vector.broadcast %cst_37 : f32 to vector<16x324xf32>
    %98 = arith.cmpf oge, %95, %97 : vector<16x324xf32>
    %99 = vector.broadcast %96 : f32 to vector<16x324xf32>
    %100 = arith.mulf %99, %95 : vector<16x324xf32>
    %101 = arith.select %98, %95, %100 : vector<16x324xi1>, vector<16x324xf32>
    %102 = vector.broadcast %0 : vector<1x324xf32> to vector<16x324xf32>
    %103 = arith.mulf %101, %102 : vector<16x324xf32>
    %104 = arith.truncf %103 : vector<16x324xf32> to vector<16x324xbf16>
    %cst_38 = arith.constant 0.000000e+00 : bf16
    %105 = vector.broadcast %cst_38 : bf16 to vector<16x19xbf16>
    %106 = tpu.concatenate %105, %104, %105 in 1 : vector<16x19xbf16>, vector<16x324xbf16>, vector<16x19xbf16> -> vector<16x362xbf16>
    %c0_39 = arith.constant 0 : index
    %c0_40 = arith.constant 0 : index
    %107 = vector.load %arg6[%c0_39, %c0_40] : memref<16x144xbf16, #tpu.memory_space<vmem>>, vector<16x144xbf16>
    %c0_41 = arith.constant 0 : index
    %c0_42 = arith.constant 0 : index
    %108 = vector.load %arg7[%c0_41, %c0_42] : memref<16x1xf32, #tpu.memory_space<vmem>>, vector<16x1xf32>
    %109 = vector.extract_strided_slice %106 {offsets = [0, 0], sizes = [16, 324], strides = [1, 1]} : vector<16x362xbf16> to vector<16x324xbf16>
    %110 = vector.extract_strided_slice %106 {offsets = [0, 1], sizes = [16, 324], strides = [1, 1]} : vector<16x362xbf16> to vector<16x324xbf16>
    %111 = vector.extract_strided_slice %106 {offsets = [0, 2], sizes = [16, 324], strides = [1, 1]} : vector<16x362xbf16> to vector<16x324xbf16>
    %112 = vector.extract_strided_slice %106 {offsets = [0, 18], sizes = [16, 324], strides = [1, 1]} : vector<16x362xbf16> to vector<16x324xbf16>
    %113 = vector.extract_strided_slice %106 {offsets = [0, 19], sizes = [16, 324], strides = [1, 1]} : vector<16x362xbf16> to vector<16x324xbf16>
    %114 = vector.extract_strided_slice %106 {offsets = [0, 20], sizes = [16, 324], strides = [1, 1]} : vector<16x362xbf16> to vector<16x324xbf16>
    %115 = vector.extract_strided_slice %106 {offsets = [0, 36], sizes = [16, 324], strides = [1, 1]} : vector<16x362xbf16> to vector<16x324xbf16>
    %116 = vector.extract_strided_slice %106 {offsets = [0, 37], sizes = [16, 324], strides = [1, 1]} : vector<16x362xbf16> to vector<16x324xbf16>
    %117 = vector.extract_strided_slice %106 {offsets = [0, 38], sizes = [16, 324], strides = [1, 1]} : vector<16x362xbf16> to vector<16x324xbf16>
    %118 = tpu.concatenate %109, %110, %111, %112, %113, %114, %115, %116, %117 in 0 : vector<16x324xbf16>, vector<16x324xbf16>, vector<16x324xbf16>, vector<16x324xbf16>, vector<16x324xbf16>, vector<16x324xbf16>, vector<16x324xbf16>, vector<16x324xbf16>, vector<16x324xbf16> -> vector<144x324xbf16>
    %cst_43 = arith.constant dense<0.000000e+00> : vector<16x324xf32>
    %119 = tpu.matmul %107, %118, %cst_43 {dimension_numbers = #tpu.dot_dimension_numbers<[1], [0], [0], [1], [0, 0, 1, 1], [], []>} : vector<16x144xbf16>, vector<144x324xbf16>, vector<16x324xf32> -> vector<16x324xf32>
    %120 = vector.broadcast %108 : vector<16x1xf32> to vector<16x324xf32>
    %121 = arith.addf %119, %120 : vector<16x324xf32>
    %c0_44 = arith.constant 0 : index
    %122 = memref.load %arg8[%c0_44] : memref<1xf32, #tpu.memory_space<smem>>
    %cst_45 = arith.constant 0.000000e+00 : f32
    %123 = vector.broadcast %cst_45 : f32 to vector<16x324xf32>
    %124 = arith.cmpf oge, %121, %123 : vector<16x324xf32>
    %125 = vector.broadcast %122 : f32 to vector<16x324xf32>
    %126 = arith.mulf %125, %121 : vector<16x324xf32>
    %127 = arith.select %124, %121, %126 : vector<16x324xi1>, vector<16x324xf32>
    %128 = vector.broadcast %0 : vector<1x324xf32> to vector<16x324xf32>
    %129 = arith.mulf %127, %128 : vector<16x324xf32>
    %130 = arith.truncf %129 : vector<16x324xf32> to vector<16x324xbf16>
    %cst_46 = arith.constant 0.000000e+00 : bf16
    %131 = vector.broadcast %cst_46 : bf16 to vector<16x19xbf16>
    %132 = tpu.concatenate %131, %130, %131 in 1 : vector<16x19xbf16>, vector<16x324xbf16>, vector<16x19xbf16> -> vector<16x362xbf16>
    %c0_47 = arith.constant 0 : index
    %c0_48 = arith.constant 0 : index
    %133 = vector.load %arg9[%c0_47, %c0_48] : memref<4x144xbf16, #tpu.memory_space<vmem>>, vector<4x144xbf16>
    %c0_49 = arith.constant 0 : index
    %c0_50 = arith.constant 0 : index
    %134 = vector.load %arg10[%c0_49, %c0_50] : memref<4x1xf32, #tpu.memory_space<vmem>>, vector<4x1xf32>
    %135 = vector.extract_strided_slice %132 {offsets = [0, 0], sizes = [16, 324], strides = [1, 1]} : vector<16x362xbf16> to vector<16x324xbf16>
    %136 = vector.extract_strided_slice %132 {offsets = [0, 1], sizes = [16, 324], strides = [1, 1]} : vector<16x362xbf16> to vector<16x324xbf16>
    %137 = vector.extract_strided_slice %132 {offsets = [0, 2], sizes = [16, 324], strides = [1, 1]} : vector<16x362xbf16> to vector<16x324xbf16>
    %138 = vector.extract_strided_slice %132 {offsets = [0, 18], sizes = [16, 324], strides = [1, 1]} : vector<16x362xbf16> to vector<16x324xbf16>
    %139 = vector.extract_strided_slice %132 {offsets = [0, 19], sizes = [16, 324], strides = [1, 1]} : vector<16x362xbf16> to vector<16x324xbf16>
    %140 = vector.extract_strided_slice %132 {offsets = [0, 20], sizes = [16, 324], strides = [1, 1]} : vector<16x362xbf16> to vector<16x324xbf16>
    %141 = vector.extract_strided_slice %132 {offsets = [0, 36], sizes = [16, 324], strides = [1, 1]} : vector<16x362xbf16> to vector<16x324xbf16>
    %142 = vector.extract_strided_slice %132 {offsets = [0, 37], sizes = [16, 324], strides = [1, 1]} : vector<16x362xbf16> to vector<16x324xbf16>
    %143 = vector.extract_strided_slice %132 {offsets = [0, 38], sizes = [16, 324], strides = [1, 1]} : vector<16x362xbf16> to vector<16x324xbf16>
    %144 = tpu.concatenate %135, %136, %137, %138, %139, %140, %141, %142, %143 in 0 : vector<16x324xbf16>, vector<16x324xbf16>, vector<16x324xbf16>, vector<16x324xbf16>, vector<16x324xbf16>, vector<16x324xbf16>, vector<16x324xbf16>, vector<16x324xbf16>, vector<16x324xbf16> -> vector<144x324xbf16>
    %cst_51 = arith.constant dense<0.000000e+00> : vector<4x324xf32>
    %145 = tpu.matmul %133, %144, %cst_51 {dimension_numbers = #tpu.dot_dimension_numbers<[1], [0], [0], [1], [0, 0, 1, 1], [], []>} : vector<4x144xbf16>, vector<144x324xbf16>, vector<4x324xf32> -> vector<4x324xf32>
    %146 = vector.broadcast %134 : vector<4x1xf32> to vector<4x324xf32>
    %147 = arith.addf %145, %146 : vector<4x324xf32>
    %148 = vector.broadcast %0 : vector<1x324xf32> to vector<4x324xf32>
    %149 = arith.mulf %147, %148 : vector<4x324xf32>
    %c1_52 = arith.constant 1 : index
    %c0_53 = arith.constant 0 : index
    %c0_54 = arith.constant 0 : index
    %150 = vector.load %arg11[%c1_52, %c0_53, %c0_54] : memref<2x4x324xf32, #tpu.memory_space<vmem>>, vector<1x4x324xf32>
    %151 = vector.shape_cast %150 : vector<1x4x324xf32> to vector<4x324xf32>
    %152 = vector.shape_cast %149 : vector<4x324xf32> to vector<1x4x324xf32>
    tpu.vector_store %arg11[%c1_52, %c0_53, %c0_54], %152 {strides = array<i32>} : memref<2x4x324xf32, #tpu.memory_space<vmem>>, vector<1x4x324xf32>,
    return
  }
  func.func @transform_0(%arg0: i32) -> (i32, i32, i32) {
    %c0_i32 = arith.constant 0 : i32
    %c0_i32_0 = arith.constant 0 : i32
    %c0_i32_1 = arith.constant 0 : i32
    return %arg0, %c0_i32, %c0_i32_0 : i32, i32, i32
  }
  func.func @transform_1(%arg0: i32) -> (i32, i32) {
    %c0_i32 = arith.constant 0 : i32
    %c0_i32_0 = arith.constant 0 : i32
    %c0_i32_1 = arith.constant 0 : i32
    return %c0_i32, %c0_i32_0 : i32, i32
  }
  func.func @transform_2(%arg0: i32) -> (i32, i32) {
    %c0_i32 = arith.constant 0 : i32
    %c0_i32_0 = arith.constant 0 : i32
    %c0_i32_1 = arith.constant 0 : i32
    return %c0_i32, %c0_i32_0 : i32, i32
  }
  func.func @transform_3(%arg0: i32) -> (i32, i32) {
    %c0_i32 = arith.constant 0 : i32
    %c0_i32_0 = arith.constant 0 : i32
    %c0_i32_1 = arith.constant 0 : i32
    return %c0_i32, %c0_i32_0 : i32, i32
  }
  func.func @transform_4(%arg0: i32) -> i32 {
    %c0_i32 = arith.constant 0 : i32
    %c0_i32_0 = arith.constant 0 : i32
    return %c0_i32 : i32
  }
  func.func @transform_5(%arg0: i32) -> (i32, i32) {
    %c0_i32 = arith.constant 0 : i32
    %c0_i32_0 = arith.constant 0 : i32
    %c0_i32_1 = arith.constant 0 : i32
    return %c0_i32, %c0_i32_0 : i32, i32
  }
  func.func @transform_6(%arg0: i32) -> (i32, i32) {
    %c0_i32 = arith.constant 0 : i32
    %c0_i32_0 = arith.constant 0 : i32
    %c0_i32_1 = arith.constant 0 : i32
    return %c0_i32, %c0_i32_0 : i32, i32
  }
  func.func @transform_7(%arg0: i32) -> i32 {
    %c0_i32 = arith.constant 0 : i32
    %c0_i32_0 = arith.constant 0 : i32
    return %c0_i32 : i32
  }
  func.func @transform_8(%arg0: i32) -> (i32, i32) {
    %c0_i32 = arith.constant 0 : i32
    %c0_i32_0 = arith.constant 0 : i32
    %c0_i32_1 = arith.constant 0 : i32
    return %c0_i32, %c0_i32_0 : i32, i32
  }
  func.func @transform_9(%arg0: i32) -> (i32, i32) {
    %c0_i32 = arith.constant 0 : i32
    %c0_i32_0 = arith.constant 0 : i32
    %c0_i32_1 = arith.constant 0 : i32
    return %c0_i32, %c0_i32_0 : i32, i32
  }
  func.func @transform_10(%arg0: i32) -> (i32, i32, i32) {
    %c0_i32 = arith.constant 0 : i32
    %c0_i32_0 = arith.constant 0 : i32
    %c0_i32_1 = arith.constant 0 : i32
    return %arg0, %c0_i32, %c0_i32_0 : i32, i32, i32
  }
}

</mosaic_0001>

<bundles_post_ra>
// kernel: conv_prelu_block.1
= control target key start
LH: loop header
LB: loop body
LE: loop exit
PB: predicated region body
PF: predicated region fallthrough
CT: control target
= control target key end

     0   :  { %s2162_s17 = smov 0   ;;  %s2931_s0 = inlined_call_operand.vmem [shape: bf16[8,8,324], index: 0, kind: input, shape index: {}]   ;;  %s2932_s1 = inlined_call_operand.vmem [shape: f32[1,324], index: 1, kind: input, shape index: {}]   ;;  %s2933_s2 = inlined_call_operand.vmem [shape: bf16[16,72], index: 2, kind: input, shape index: {}]   ;;  %s2934_s3 = inlined_call_operand.vmem [shape: f32[16,1], index: 3, kind: input, shape index: {}]   ;;  %s2935_s4 = inlined_call_operand.<no memory space> [shape: f32[1], index: 4, kind: input, shape index: {}]   ;;  %s2936_s5 = inlined_call_operand.vmem [shape: bf16[16,144], index: 5, kind: input, shape index: {}]   ;;  %s2937_s6 = inlined_call_operand.vmem [shape: f32[16,1], index: 6, kind: input, shape index: {}]   ;;  %s2938_s7 = inlined_call_operand.<no memory space> [shape: f32[1], index: 7, kind: input, shape index: {}]   ;;  %s2939_s8 = inlined_call_operand.vmem [shape: bf16[4,144], index: 8, kind: input, shape index: {}]   ;;  %s2940_s9 = inlined_call_operand.vmem [shape: f32[4,1], index: 9, kind: input, shape index: {}]   ;;  %s2941_s10 = inlined_call_operand.vmem [shape: f32[8,4,324], index: 10, kind: output, shape index: {}]  }
   0x1   :  { %15 = sst [smem:[#allocation2]] %s2935_s4 }
   0x2   :  { %16 = sst [smem:[#allocation3]] %s2938_s7 }
   0x3 LB: > { %s1956_s18 = sadd.s32 4294967295, %s2087_s17   ;;  %p1960_p0 = scmp.ge.s32.totalorder %s2087_s17, 1  ;;  %s2087_s17 = sphi %s2162_s17, %s22_s17  }
   0x4   : > { %p316_p1 = scmp.lt.s32.totalorder %s2087_s17, 5 }
   0x6   : > { %p317_p2 = pnand %p1960_p0, %p316_p1 }
   0x7   : > { %s1961_s4 = sshll.u32 (!%p317_p2), %s1956_s18, 1  ;;  %s2089_s22 = smov (!%p317_p2), 19  }
   0x8   : > { %320 = sbr.rel (%p317_p2) target bundleno = 2525 (0x9dd), region = 60  ;;  %p357_p3 = scmp.lt.s32.totalorder (!%p317_p2), %s1961_s4, 7 }
   0x9   : > { %s2091_s23 = smov (!%p317_p2), 90   ;;  %s2092_s24 = smov (!%p317_p2), 92  }
   0xa   : > { %s2093_s25 = smov (!%p317_p2), 109   ;;  %s2094_s26 = smov (!%p317_p2), 126  }
   0xb   : > { %s2095_s27 = smov (!%p317_p2), 91   ;;  %s2096_s28 = smov (!%p317_p2), 108  }
   0xc   : > { %s2097_s29 = smov (!%p317_p2), 110   ;;  %s2100_s30 = smov (!%p317_p2), 127  }
   0xd   : > { %s2967_s4 = smov (!%p357_p3, %s1961_s4), 7  ;;  %v2090_v4 = vmov 0.0   ;;  %vm388_vm0 = vcmask 154624   ;;  %vm395_vm1 = vcmask 711680   ;;  %vm2943_vm2 = vmmov 0   ;;  %v2243_v16 = vld [vmem:[%s2934_s3 + $0x8] sm:$0xff] }
   0xe   : > { %s2047_s7 = smul.u32 12, %s2967_s4  ;;  %2019 = vmatprep.subr.bf16.mxu1 %v2090_v4  ;;  %2029 = vmatprep.mubr.msk.bf16.mxu1 %vm2943_vm2, %v2090_v4  ;;  %v2099_v15 = vmov 0   ;;  %v2248_v17 = vld [vmem:[%s2934_s3] sm:$0xff]  ;;  %vm476_vm3 = vcmask 736256   ;;  %vm2944_vm4 = vcmask 1043456   ;;  %vm467_vm5 = vcmask 744448  }
   0xf   : > { %586 = vmatprep.mubr.bf16.mxu0 %v2099_v15  ;;  %2068 = vset.pattern.permute.xlu1 %v2099_v15  ;;  %vm458_vm6 = vcmask 752640   ;;  %vm449_vm7 = vcmask 883712   ;;  %vm440_vm8 = vcmask 891904   ;;  %vm431_vm9 = vcmask 900096   ;;  %s638_s18 = sld [smem:[#allocation2]] }
  0x10   : > { %s2178_s21 = scalar_lea.vmem %s2931_s0, %s2047_s7  ;;  %2069 = vset.pattern.permute.xlu0 %v2099_v15  ;;  %vm422_vm10 = vcmask 1031168   ;;  %vm413_vm11 = vcmask 1039360   ;;  %vm2942_vm12 = vcmask 588800   ;;  %s902_s20 = sld [smem:[#allocation3]] }
  0x11   : > { %v372_v0 = vld [vmem:[%s2178_s21] sm:$0xff]  ;;  %v2072_v3 = vld [vmem:[%s2178_s21 + $0x8] ss:$0 sps:$4 sm:$0xff]  }
  0x12   : > { %v1966_v1 = vcombine.high %v372_v0, %v372_v0  ;;  %v1965_v2 = vcombine.low %v372_v0, %v372_v0 }
  0x14   : > { %384 = vrot.lane.b32.xlu0 %v1966_v1, %s2089_s22  ;;  %382 = vrot.lane.b32.xlu1 %v1965_v2, %s2089_s22 }
  0x18   : > { %386 = vrot.lane.b32.xlu0 %v2072_v3, %s2089_s22 }
  0x86   : > { %v385_v5 = vpop.permute.xlu0 %384  ;;  %v383_v6 = vpop.permute.xlu1 %382 }
  0x87   : > { %v2187_v7 = vsel %vm388_vm0, %v383_v6, %v385_v5  ;;  %v2190_v8 = vsel %vm388_vm0, 0, %v383_v6 }
  0x88   : > { %470 = vrot.lane.b32.xlu1 %v2190_v8, %s2091_s23  ;;  %472 = vrot.lane.b32.xlu0 %v2187_v7, %s2091_s23  ;;  %v404_v12 = vrot.slane %v2190_v8, 4  ;;  %v405_v13 = vrot.slane %v2187_v7, 4 }
  0x8a   : > { %v387_v9 = vpop.permute.xlu0 %386 }
  0x8b   : > { %v390_v10 = vsel %vm388_vm0, %v385_v5, %v387_v9  ;;  %v2073_v9 = vld [vmem:[%s2933_s2] sm:$0xff]  }
  0x8c   : > { %v2198_v11 = vsel %vm395_vm1, %v390_v10, 0  ;;  %454 = vrot.lane.b32.xlu0 %v2187_v7, %s2092_s24 }
  0x8d   : > { %474 = vrot.lane.b32.xlu1 %v2198_v11, %s2091_s23  ;;  %v406_v14 = vrot.slane %v2198_v11, 4 }
  0x90   : > { %452 = vrot.lane.b32.xlu0 %v2190_v8, %s2092_s24 }
  0x91   : > { %456 = vrot.lane.b32.xlu1 %v2198_v11, %s2092_s24 }
  0x94   : > { %436 = vrot.lane.b32.xlu0 %v2187_v7, %s2093_s25 }
  0x95   : > { %438 = vrot.lane.b32.xlu1 %v2198_v11, %s2093_s25 }
  0x98   : > { %434 = vrot.lane.b32.xlu0 %v2190_v8, %s2093_s25 }
  0x99   : > { %420 = vrot.lane.b32.xlu1 %v2198_v11, %s2094_s26 }
  0x9c   : > { %418 = vrot.lane.b32.xlu0 %v2187_v7, %s2094_s26 }
  0x9d   : > { %461 = vrot.lane.b32.xlu1 %v404_v12, %s2095_s27 }
  0xa0   : > { %416 = vrot.lane.b32.xlu0 %v2190_v8, %s2094_s26 }
  0xa1   : > { %443 = vrot.lane.b32.xlu1 %v404_v12, %s2096_s28 }
  0xa4   : > { %463 = vrot.lane.b32.xlu0 %v405_v13, %s2095_s27 }
  0xa5   : > { %425 = vrot.lane.b32.xlu1 %v404_v12, %s2097_s29 }
  0xa8   : > { %445 = vrot.lane.b32.xlu0 %v405_v13, %s2096_s28 }
  0xa9   : > { %465 = vrot.lane.b32.xlu1 %v406_v14, %s2095_s27 }
  0xac   : > { %427 = vrot.lane.b32.xlu0 %v405_v13, %s2097_s29 }
  0xad   : > { %447 = vrot.lane.b32.xlu1 %v406_v14, %s2096_s28 }
  0xb0   : > { %409 = vrot.lane.b32.xlu0 %v405_v13, %s2100_s30 }
  0xb1   : > { %429 = vrot.lane.b32.xlu1 %v406_v14, %s2097_s29 }
  0xb4   : > { %407 = vrot.lane.b32.xlu0 %v404_v12, %s2100_s30 }
  0xb5   : > { %411 = vrot.lane.b32.xlu1 %v406_v14, %s2100_s30 }
  0xb8   : > { %533 = vperm.xlu0 %2069, %v2243_v16  }
  0xb9   : > { %528 = vperm.xlu1 %2068, %v2248_v17  }
  0xfa   : > { %v471_v18 = vpop.permute.xlu1 %470  ;;  %v473_v19 = vpop.permute.xlu0 %472 }
  0xfb   : > { %v477_v21 = vsel %vm476_vm3, %v471_v18, %v473_v19 }
  0xfc   : > { %v546_v25 = vsel %vm2944_vm4, %v477_v21, 0  ;;  %v2296_v21 = vstv %s638_s18 }
  0xfe   : > { %v455_v20 = vpop.permute.xlu0 %454 }
  0xff   : > { %v475_v22 = vpop.permute.xlu1 %474 }
 0x100   : > { %v478_v23 = vsel %vm476_vm3, %v473_v19, %v475_v22  ;;  %v552_v24 = vsel %vm2944_vm4, %v475_v22, 0 }
 0x101   : > { %1969 = vmatprep.subr.msk.bf16.mxu0 %vm2944_vm4, %v478_v23  ;;  %2020 = vmatpush3.bf16.msra.mxu1 %v552_v24 }
 0x102   : > { %561 = vmatpush1.bf16.msra.mxu0 %v546_v25  ;;  %v453_v26 = vpop.permute.xlu0 %452  ;;  %2021 = vmatprep.subr.bf16.mxu1 %v2090_v4 }
 0x103   : > { %v457_v27 = vpop.permute.xlu1 %456  ;;  %v459_v44 = vsel %vm458_vm6, %v453_v26, %v455_v20  ;;  %v371_v26 = vld [vmem:[%s2932_s1] sm:$0x7] }
 0x104   : > { %v460_v41 = vsel %vm458_vm6, %v455_v20, %v457_v27 }
 0x106   : > { %v437_v28 = vpop.permute.xlu0 %436 }
 0x107   : > { %v439_v29 = vpop.permute.xlu1 %438 }
 0x108   : > { %v442_v50 = vsel %vm440_vm8, %v437_v28, %v439_v29 }
 0x10a   : > { %v435_v30 = vpop.permute.xlu0 %434 }
 0x10b   : > { %v421_v31 = vpop.permute.xlu1 %420  ;;  %v441_v53 = vsel %vm440_vm8, %v435_v30, %v437_v28 }
 0x10e   : > { %v419_v32 = vpop.permute.xlu0 %418 }
 0x10f   : > { %v462_v33 = vpop.permute.xlu1 %461  ;;  %v424_v59 = vsel %vm422_vm10, %v419_v32, %v421_v31 }
 0x112   : > { %v417_v34 = vpop.permute.xlu0 %416 }
 0x113   : > { %v444_v35 = vpop.permute.xlu1 %443  ;;  %v423_v62 = vsel %vm422_vm10, %v417_v34, %v419_v32 }
 0x116   : > { %v464_v36 = vpop.permute.xlu0 %463 }
 0x117   : > { %v426_v37 = vpop.permute.xlu1 %425  ;;  %v468_v39 = vsel %vm467_vm5, %v462_v33, %v464_v36 }
 0x118   : > { %v516_v47 = vsel %vm2944_vm4, %v459_v44, %v468_v39 }
 0x11a   : > { %v446_v38 = vpop.permute.xlu0 %445 }
 0x11b   : > { %v466_v40 = vpop.permute.xlu1 %465  ;;  %v450_v48 = vsel %vm449_vm7, %v444_v35, %v446_v38 }
 0x11c   : > { %v469_v42 = vsel %vm467_vm5, %v464_v36, %v466_v40  ;;  %v524_v43 = vsel %vm2944_vm4, %v457_v27, %v466_v40  ;;  %v504_v56 = vsel %vm2944_vm4, %v441_v53, %v450_v48 }
 0x11d   : > { %2022 = vmatpush3.bf16.msra.mxu1 %v524_v43  ;;  %v520_v45 = vsel %vm2944_vm4, %v460_v41, %v469_v42 }
 0x11e   : > { %562 = vmatprep.subr.bf16.mxu0 %v520_v45  ;;  %v428_v46 = vpop.permute.xlu0 %427  ;;  %2023 = vmatprep.subr.bf16.mxu1 %v2090_v4 }
 0x11f   : > { %v448_v49 = vpop.permute.xlu1 %447  ;;  %563 = vmatpush1.bf16.msra.mxu0 %v516_v47  ;;  %v432_v57 = vsel %vm431_vm9, %v426_v37, %v428_v46 }
 0x120   : > { %v451_v51 = vsel %vm449_vm7, %v446_v38, %v448_v49  ;;  %v512_v52 = vsel %vm2944_vm4, %v439_v29, %v448_v49  ;;  %v492_v1 = vsel %vm2944_vm4, %v423_v62, %v432_v57 }
 0x121   : > { %2024 = vmatpush3.bf16.msra.mxu1 %v512_v52  ;;  %v508_v54 = vsel %vm2944_vm4, %v442_v50, %v451_v51 }
 0x122   : > { %564 = vmatprep.subr.bf16.mxu0 %v508_v54  ;;  %v410_v55 = vpop.permute.xlu0 %409  ;;  %2025 = vmatprep.subr.bf16.mxu1 %v2090_v4 }
 0x123   : > { %v430_v58 = vpop.permute.xlu1 %429  ;;  %565 = vmatpush1.bf16.msra.mxu0 %v504_v56 }
 0x124   : > { %v433_v60 = vsel %vm431_vm9, %v428_v46, %v430_v58  ;;  %v500_v61 = vsel %vm2944_vm4, %v421_v31, %v430_v58 }
 0x125   : > { %2026 = vmatpush3.bf16.msra.mxu1 %v500_v61  ;;  %v496_v63 = vsel %vm2944_vm4, %v424_v59, %v433_v60 }
 0x126   : > { %566 = vmatprep.subr.bf16.mxu0 %v496_v63  ;;  %v408_v0 = vpop.permute.xlu0 %407  ;;  %2027 = vmatprep.subr.bf16.mxu1 %v2090_v4 }
 0x127   : > { %v414_v2 = vsel %vm413_vm11, %v408_v0, %v410_v55  ;;  %v412_v3 = vpop.permute.xlu1 %411  ;;  %567 = vmatpush1.bf16.msra.mxu0 %v492_v1 }
 0x128   : > { %v415_v5 = vsel %vm413_vm11, %v410_v55, %v412_v3  ;;  %v488_v6 = vsel %vm2944_vm4, %v2198_v11, %v412_v3  ;;  %v481_v12 = vsel %vm2944_vm4, %v2190_v8, %v414_v2  ;;  %v659_v11 = vlaneseq  ;;  %v2364_v3 = vld [vmem:[%s2936_s5 + $0x4] ss:$8 sps:$4 sm:$0xff]  }
 0x129   : > { %2028 = vmatpush3.bf16.msra.mxu1 %v488_v6  ;;  %v485_v10 = vsel %vm2944_vm4, %v2187_v7, %v415_v5  ;;  %v2386_v5 = vld [vmem:[%s2937_s6 + $0x8] sm:$0xff]  ;;  %v2391_v6 = vld [vmem:[%s2937_s6] sm:$0xff] }
 0x12a   : > { %568 = vmatprep.subr.bf16.mxu0 %v485_v10  ;;  %861 = vmatprep.subr.bf16.mxu1 %v2099_v15  ;;  %v660_v13 = vshrl.u32 %v659_v11, 7 }
 0x12b   : > { %569 = vmatpush1.bf16.msra.mxu0 %v481_v12 }
 0x12c   : > { %2030 = vmatmul.mubr.msk.bf16.vlgmr.msra.gmra.mxu1 %vm2942_vm12, %v2073_v9  ;;  %v661_v23 = vsub.s32 0, %v660_v13  ;;  %v665_v29 = vsub.s32 1, %v660_v13  ;;  %v669_v38 = vsub.s32 2, %v660_v13 }
 0x12e   : > { %1970 = vmatmul.mubr.msk.bf16.vlgmr.msra.gmra.mxu0 %vm2942_vm12, %v2073_v9  ;;  %v2303_v34 = vrot.slane %v371_v26, %v661_v23  ;;  %v2307_v41 = vrot.slane %v371_v26, %v665_v29  ;;  %v2311_v48 = vrot.slane %v371_v26, %v669_v38 }
 0x133   : > { %v534_v19 = vpop.permute.xlu0 %533 }
 0x134   : > { %v529_v18 = vpop.permute.xlu1 %528 }
 0x1ec   : > { %v631_v14 = vpop.f32.mrf.mxu1 }
 0x1ed   : > { %v632_v8 = vadd.f32 %v631_v14, %v529_v18 }
 0x1ee   : > { %v2031_v20 = vpop.f32.mrf.mxu1  ;;  %v588_v7 = vpop.f32.mrf.mxu0 }
 0x1ef   : > { %v589_v22 = vadd.f32 %v588_v7, %v529_v18  ;;  %v648_v35 = vmul.f32 %v2296_v21, %v632_v8  ;;  %vm641_vm15 = vcmp.ge.f32.partialorder %v632_v8, 0.0 }
 0x1f0   : > { %v590_v24 = vpop.f32.mrf.mxu0  ;;  %v634_v25 = vpop.f32.mrf.mxu1 }
 0x1f1   : > { %v591_v27 = vadd.f32 %v590_v24, %v529_v18  ;;  %v635_v28 = vadd.f32 %v634_v25, %v534_v19  ;;  %v646_v30 = vmul.f32 %v2296_v21, %v589_v22  ;;  %vm639_vm13 = vcmp.ge.f32.partialorder %v589_v22, 0.0 }
 0x1f2   : > { %v592_v31 = vpop.f32.mrf.mxu0  ;;  %v2032_v32 = vpop.f32.mrf.mxu1  ;;  %v654_v47 = vsel %vm641_vm15, %v632_v8, %v648_v35 }
 0x1f3   : > { %v647_v33 = vmul.f32 %v2296_v21, %v591_v27  ;;  %vm640_vm14 = vcmp.ge.f32.partialorder %v591_v27, 0.0  ;;  %v593_v36 = vadd.f32 %v592_v31, %v534_v19  ;;  %v651_v39 = vmul.f32 %v2296_v21, %v635_v28 }
 0x1f4   : > { %v594_v37 = vpop.f32.mrf.mxu0  ;;  %v652_v42 = vsel %vm639_vm13, %v589_v22, %v646_v30  ;;  %vm644_vm2 = vcmp.ge.f32.partialorder %v635_v28, 0.0  ;;  %v676_v57 = vmul.f32 %v2311_v48, %v654_v47 }
 0x1f5   : > { %v595_v40 = vadd.f32 %v594_v37, %v534_v19  ;;  %vm642_vm12 = vcmp.ge.f32.partialorder %v593_v36, 0.0  ;;  %v649_v43 = vmul.f32 %v2296_v21, %v593_v36  ;;  %v653_v44 = vsel %vm640_vm14, %v591_v27, %v647_v33 }
 0x1f6   : > { %v674_v50 = vmul.f32 %v2303_v34, %v652_v42  ;;  %v657_v52 = vsel %vm644_vm2, %v635_v28, %v651_v39  ;;  %v675_v53 = vmul.f32 %v2307_v41, %v653_v44  ;;  %vm2945_vm2 = vcmask 130048  }
 0x1f7   : > { %vm643_vm4 = vcmp.ge.f32.partialorder %v595_v40, 0.0  ;;  %v650_v45 = vmul.f32 %v2296_v21, %v595_v40  ;;  %v655_v46 = vsel %vm642_vm12, %v593_v36, %v649_v43  ;;  %v679_v58 = vmul.f32 %v2311_v48, %v657_v52  ;;  %1977 = vmatprep.mubr.msk.bf16.mxu1 %vm2945_vm2, %v2364_v3  ;;  %1976 = vmatprep.mubr.msk.bf16.mxu0 %vm2945_vm2, %v2364_v3  ;;  %v2427_v52 = vld [vmem:[%s2936_s5] ss:$8 sps:$4 sm:$0xff]  }
 0x1f8   : > { %v677_v51 = vmul.f32 %v2303_v34, %v655_v46 }
 0x1f9   : > { %v656_v49 = vsel %vm643_vm4, %v595_v40, %v650_v45  ;;  %v682_v59 = vpack.c.bf16 %v679_v58, %v676_v57  ;;  %vm2420_vm4 = vmneg %vm388_vm0 }
 0x1fa   : > { %v678_v54 = vmul.f32 %v2307_v41, %v656_v49  ;;  %v680_v55 = vpack.c.bf16 %v677_v51, %v674_v50 }
 0x1fc   : > { %v681_v56 = vpack.c.bf16 %v678_v54, %v675_v53  ;;  %686 = vrot.lane.b32.xlu0 %v680_v55, %s2089_s22 }
 0x1fe   : > { %688 = vrot.lane.b32.xlu1 %v681_v56, %s2089_s22 }
 0x202   : > { %690 = vrot.lane.b32.xlu1 %v682_v59, %s2089_s22  ;;  %v2437_v59 = vstv %s902_s20 }
 0x26e   : > { %v2322_v60 = vpop.permute.xlu0 %686 }
 0x26f   : > { %v696_v61 = vsel %vm388_vm0, 0, %v2322_v60 }
 0x270   : > { %v689_v62 = vpop.permute.xlu1 %688  ;;  %762 = vrot.lane.b32.xlu0 %v696_v61, %s2092_s24  ;;  %773 = vrot.lane.b32.xlu1 %v696_v61, %s2095_s27 }
 0x271   : > { %v2330_v63 = vsel %vm388_vm0, %v2322_v60, %v689_v62 }
 0x274   : > { %751 = vrot.lane.b32.xlu1 %v696_v61, %s2096_s28  ;;  %764 = vrot.lane.b32.xlu0 %v2330_v63, %s2092_s24  ;;  %v691_v0 = vpop.permute.xlu1 %690 }
 0x275   : > { %v693_v1 = vsel %vm388_vm0, %v689_v62, %v691_v0 }
 0x276   : > { %v2341_v2 = vsel %vm395_vm1, %v693_v1, 0 }
 0x278   : > { %742 = vrot.lane.b32.xlu0 %v2330_v63, %s2093_s25  ;;  %775 = vrot.lane.b32.xlu1 %v2330_v63, %s2095_s27 }
 0x27c   : > { %777 = vrot.lane.b32.xlu0 %v2341_v2, %s2095_s27  ;;  %753 = vrot.lane.b32.xlu1 %v2330_v63, %s2096_s28 }
 0x280   : > { %740 = vrot.lane.b32.xlu0 %v696_v61, %s2093_s25  ;;  %766 = vrot.lane.b32.xlu1 %v2341_v2, %s2092_s24 }
 0x284   : > { %755 = vrot.lane.b32.xlu0 %v2341_v2, %s2096_s28  ;;  %731 = vrot.lane.b32.xlu1 %v2330_v63, %s2097_s29 }
 0x288   : > { %720 = vrot.lane.b32.xlu0 %v2330_v63, %s2094_s26  ;;  %744 = vrot.lane.b32.xlu1 %v2341_v2, %s2093_s25 }
 0x28c   : > { %733 = vrot.lane.b32.xlu0 %v2341_v2, %s2097_s29  ;;  %729 = vrot.lane.b32.xlu1 %v696_v61, %s2097_s29 }
 0x290   : > { %718 = vrot.lane.b32.xlu0 %v696_v61, %s2094_s26  ;;  %722 = vrot.lane.b32.xlu1 %v2341_v2, %s2094_s26 }
 0x294   : > { %711 = vrot.lane.b32.xlu0 %v2341_v2, %s2100_s30  ;;  %709 = vrot.lane.b32.xlu1 %v2330_v63, %s2100_s30 }
 0x298   : > { %786 = vrot.lane.b32.xlu0 %v2330_v63, %s2091_s23  ;;  %707 = vrot.lane.b32.xlu1 %v696_v61, %s2100_s30 }
 0x29c   : > { %784 = vrot.lane.b32.xlu0 %v696_v61, %s2091_s23  ;;  %788 = vrot.lane.b32.xlu1 %v2341_v2, %s2091_s23 }
 0x2a0   : > { %802 = vperm.xlu0 %2069, %v2386_v5   ;;  %797 = vperm.xlu1 %2068, %v2391_v6  }
 0x2e2   : > { %v763_v9 = vpop.permute.xlu0 %762  ;;  %v774_v10 = vpop.permute.xlu1 %773 }
 0x2e6   : > { %v752_v12 = vpop.permute.xlu1 %751  ;;  %v765_v11 = vpop.permute.xlu0 %764 }
 0x2e7   : > { %v768_v24 = vsel %vm458_vm6, %v763_v9, %v765_v11 }
 0x2ea   : > { %v743_v13 = vpop.permute.xlu0 %742  ;;  %v776_v14 = vpop.permute.xlu1 %775 }
 0x2eb   : > { %v779_v7 = vsel %vm467_vm5, %v774_v10, %v776_v14 }
 0x2ee   : > { %v778_v18 = vpop.permute.xlu0 %777  ;;  %v754_v19 = vpop.permute.xlu1 %753 }
 0x2ef   : > { %862 = vmatpush1.bf16.msra.mxu1 %v778_v18  ;;  %v780_v20 = vsel %vm467_vm5, %v776_v14, %v778_v18  ;;  %v757_v28 = vsel %vm449_vm7, %v752_v12, %v754_v19 }
 0x2f0   : > { %818 = vmatprep.subr.bf16.mxu0 %v780_v20  ;;  %863 = vmatprep.subr.bf16.mxu1 %v2099_v15 }
 0x2f1   : > { %819 = vmatpush1.bf16.msra.mxu0 %v779_v7 }
 0x2f2   : > { %v741_v22 = vpop.permute.xlu0 %740  ;;  %v767_v23 = vpop.permute.xlu1 %766 }
 0x2f3   : > { %864 = vmatpush1.bf16.msra.mxu1 %v767_v23  ;;  %v769_v8 = vsel %vm458_vm6, %v765_v11, %v767_v23  ;;  %v746_v32 = vsel %vm440_vm8, %v741_v22, %v743_v13 }
 0x2f4   : > { %820 = vmatprep.subr.bf16.mxu0 %v769_v8  ;;  %865 = vmatprep.subr.bf16.mxu1 %v2099_v15 }
 0x2f5   : > { %821 = vmatpush1.bf16.msra.mxu0 %v768_v24 }
 0x2f6   : > { %v756_v25 = vpop.permute.xlu0 %755  ;;  %v732_v26 = vpop.permute.xlu1 %731 }
 0x2f7   : > { %866 = vmatpush1.bf16.msra.mxu1 %v756_v25  ;;  %v758_v27 = vsel %vm449_vm7, %v754_v19, %v756_v25  ;;  %v1983_v25 = vld [vmem:[%s2178_s21 + $0xc] sm:$0xff] }
 0x2f8   : > { %822 = vmatprep.subr.bf16.mxu0 %v758_v27  ;;  %867 = vmatprep.subr.bf16.mxu1 %v2099_v15 }
 0x2f9   : > { %823 = vmatpush1.bf16.msra.mxu0 %v757_v28 }
 0x2fa   : > { %v721_v29 = vpop.permute.xlu0 %720  ;;  %v745_v30 = vpop.permute.xlu1 %744 }
 0x2fb   : > { %868 = vmatpush1.bf16.msra.mxu1 %v745_v30  ;;  %v747_v31 = vsel %vm440_vm8, %v743_v13, %v745_v30  ;;  %v1986_v30 = vcombine.high %v1983_v25, %v1983_v25 }
 0x2fc   : > { %824 = vmatprep.subr.bf16.mxu0 %v747_v31  ;;  %869 = vmatprep.subr.bf16.mxu1 %v2099_v15 }
 0x2fd   : > { %825 = vmatpush1.bf16.msra.mxu0 %v746_v32 }
 0x2fe   : > { %v734_v33 = vpop.permute.xlu0 %733  ;;  %v730_v35 = vpop.permute.xlu1 %729 }
 0x2ff   : > { %v735_v36 = vsel %vm431_vm9, %v730_v35, %v732_v26  ;;  %870 = vmatpush1.bf16.msra.mxu1 %v734_v33  ;;  %v736_v37 = vsel %vm431_vm9, %v732_v26, %v734_v33 }
 0x300   : > { %826 = vmatprep.subr.bf16.mxu0 %v736_v37  ;;  %871 = vmatprep.subr.bf16.mxu1 %v2099_v15 }
 0x301   : > { %827 = vmatpush1.bf16.msra.mxu0 %v735_v36 }
 0x302   : > { %v719_v38 = vpop.permute.xlu0 %718  ;;  %v723_v39 = vpop.permute.xlu1 %722 }
 0x303   : > { %v724_v40 = vsel %vm422_vm10, %v719_v38, %v721_v29  ;;  %872 = vmatpush1.bf16.msra.mxu1 %v723_v39  ;;  %v725_v42 = vsel %vm422_vm10, %v721_v29, %v723_v39  ;;  %v1985_v38 = vcombine.low %v1983_v25, %v1983_v25 }
 0x304   : > { %828 = vmatprep.subr.bf16.mxu0 %v725_v42  ;;  %873 = vmatprep.subr.bf16.mxu1 %v2099_v15 }
 0x305   : > { %829 = vmatpush1.bf16.msra.mxu0 %v724_v40 }
 0x306   : > { %v712_v43 = vpop.permute.xlu0 %711  ;;  %v710_v44 = vpop.permute.xlu1 %709 }
 0x307   : > { %874 = vmatpush1.bf16.msra.mxu1 %v712_v43  ;;  %v714_v45 = vsel %vm413_vm11, %v710_v44, %v712_v43  ;;  %v2079_v43 = vld [vmem:[%s2178_s21 + $0x14] ss:$0 sps:$4 sm:$0xff]  }
 0x308   : > { %830 = vmatprep.subr.bf16.mxu0 %v714_v45  ;;  %875 = vmatprep.subr.bf16.mxu1 %v2099_v15 }
 0x30a   : > { %v787_v46 = vpop.permute.xlu0 %786  ;;  %v708_v47 = vpop.permute.xlu1 %707 }
 0x30b   : > { %v713_v49 = vsel %vm413_vm11, %v708_v47, %v710_v44  ;;  %876 = vmatpush1.bf16.msra.mxu1 %v2341_v2 }
 0x30c   : > { %831 = vmatpush1.bf16.msra.mxu0 %v713_v49  ;;  %891 = vmatprep.subr.bf16.mxu1 %v2099_v15 }
 0x30d   : > { %832 = vmatprep.subr.bf16.mxu0 %v2330_v63 }
 0x30e   : > { %v789_v51 = vpop.permute.xlu1 %788  ;;  %v785_v54 = vpop.permute.xlu0 %784 }
 0x30f   : > { %892 = vmatpush2.bf16.msra.mxu1 %v789_v51  ;;  %v791_v53 = vsel %vm476_vm3, %v787_v46, %v789_v51  ;;  %v790_v55 = vsel %vm476_vm3, %v785_v54, %v787_v46 }
 0x310   : > { %1975 = vmatpush1.bf16.msk.msra.mxu0 %vm2420_vm4, %v2322_v60  ;;  %1100 = vmatprep.subr.bf16.mxu1 %v2099_v15 }
 0x311   : > { %848 = vmatprep.subr.bf16.mxu0 %v791_v53 }
 0x312   : > { %894 = vmatmul.mubr.bf16.vlgmr.msra.gmra.mxu1 %v2427_v52 }
 0x314   : > { %849 = vmatpush2.bf16.msra.mxu0 %v790_v55 }
 0x317   : > { %851 = vmatmul.mubr.bf16.vlgmr.msra.gmra.mxu0 %v2427_v52 }
 0x31b   : > { %v798_v56 = vpop.permute.xlu1 %797  ;;  %v803_v62 = vpop.permute.xlu0 %802 }
 0x3d2   : > { %v895_v57 = vpop.f32.mrf.mxu1 }
 0x3d3   : > { %v896_v58 = vadd.f32 %v895_v57, %v798_v56 }
 0x3d4   : > { %v897_v61 = vpop.f32.mrf.mxu1 }
 0x3d5   : > { %v912_v60 = vmul.f32 %v2437_v59, %v896_v58  ;;  %vm905_vm12 = vcmp.ge.f32.partialorder %v896_v58, 0.0 }
 0x3d6   : > { %v898_v63 = vpop.f32.mrf.mxu1 }
 0x3d7   : > { %v899_v0 = vadd.f32 %v898_v63, %v803_v62  ;;  %v852_v1 = vpop.f32.mrf.mxu0  ;;  %v918_v12 = vsel %vm905_vm12, %v896_v58, %v912_v60 }
 0x3d8   : > { %v900_v2 = vpop.f32.mrf.mxu1  ;;  %v853_v18 = vadd.f32 %v852_v1, %v798_v56  ;;  %v924_v22 = vmul.f32 %v918_v12, %v2311_v48  ;;  %v2540_v1 = vld.sshfl [vmem:[%s2939_s8] sm:$0x33 pattern:$0x76325410] }
 0x3d9   : > { %vm908_vm13 = vcmp.ge.f32.partialorder %v899_v0, 0.0  ;;  %v915_v9 = vmul.f32 %v2437_v59, %v899_v0  ;;  %v854_v10 = vpop.f32.mrf.mxu0  ;;  %v2546_v2 = vcombine.high %v2540_v1, %v2540_v1 }
 0x3da   : > { %v855_v11 = vadd.f32 %v854_v10, %v798_v56  ;;  %v910_v27 = vmul.f32 %v2437_v59, %v853_v18 }
 0x3db   : > { %v921_v13 = vsel %vm908_vm13, %v899_v0, %v915_v9  ;;  %v856_v14 = vpop.f32.mrf.mxu0  ;;  %vm903_vm13 = vcmp.ge.f32.partialorder %v853_v18, 0.0  ;;  %1982 = vmatprep.mubr.msk.bf16.mxu1 %vm2945_vm2, %v2546_v2  ;;  %1981 = vmatprep.mubr.msk.bf16.mxu0 %vm2945_vm2, %v2546_v2 }
 0x3dc   : > { %v911_v19 = vmul.f32 %v2437_v59, %v855_v11  ;;  %v857_v20 = vadd.f32 %v856_v14, %v803_v62  ;;  %vm904_vm14 = vcmp.ge.f32.partialorder %v855_v11, 0.0  ;;  %v927_v23 = vmul.f32 %v921_v13, %v2311_v48 }
 0x3dd   : > { %v858_v7 = vpop.f32.mrf.mxu0  ;;  %v916_v36 = vsel %vm903_vm13, %v853_v18, %v910_v27 }
 0x3de   : > { %v913_v8 = vmul.f32 %v2437_v59, %v857_v20  ;;  %v859_v24 = vadd.f32 %v858_v7, %v803_v62  ;;  %vm906_vm15 = vcmp.ge.f32.partialorder %v857_v20, 0.0  ;;  %v930_v26 = vpack.c.bf16 %v927_v23, %v924_v22 }
 0x3df   : > { %v917_v28 = vsel %vm904_vm14, %v855_v11, %v911_v19  ;;  %v922_v40 = vmul.f32 %v916_v36, %v2303_v34  ;;  %vm2948_vm14 = vcmask 1043456  }
 0x3e0   : > { %vm907_vm12 = vcmp.ge.f32.partialorder %v859_v24, 0.0  ;;  %v914_v29 = vmul.f32 %v2437_v59, %v859_v24  ;;  %938 = vrot.lane.b32.xlu0 %v930_v26, %s2089_s22  ;;  %v919_v31 = vsel %vm906_vm15, %v857_v20, %v913_v8  ;;  %v923_v33 = vmul.f32 %v917_v28, %v2307_v41  ;;  %vm2949_vm15 = vmmov %vm2948_vm14 }
 0x3e1   : > { %v925_v39 = vmul.f32 %v919_v31, %v2303_v34  ;;  %vm2951_vm13 = vmmov %vm2948_vm14 }
 0x3e2   : > { %v920_v32 = vsel %vm907_vm12, %v859_v24, %v914_v29  ;;  %vm2950_vm12 = vmmov 0  }
 0x3e3   : > { %v926_v35 = vmul.f32 %v920_v32, %v2307_v41  ;;  %v928_v42 = vpack.c.bf16 %v925_v39, %v922_v40 }
 0x3e4   : > { %1163 = vrot.lane.b32.xlu0 %v1986_v30, %s2089_s22 }
 0x3e5   : > { %v929_v37 = vpack.c.bf16 %v926_v35, %v923_v33 }
 0x3e7   : > { %936 = vrot.lane.b32.xlu1 %v929_v37, %s2089_s22 }
 0x3e8   : > { %1161 = vrot.lane.b32.xlu0 %v1985_v38, %s2089_s22 }
 0x3eb   : > { %934 = vrot.lane.b32.xlu1 %v928_v42, %s2089_s22 }
 0x3ef   : > { %1165 = vrot.lane.b32.xlu1 %v2079_v43, %s2089_s22 }
 0x452   : > { %v939_v44 = vpop.permute.xlu0 %938 }
 0x456   : > { %v1164_v45 = vpop.permute.xlu0 %1163 }
 0x459   : > { %v937_v46 = vpop.permute.xlu1 %936 }
 0x45a   : > { %v1162_v47 = vpop.permute.xlu0 %1161  ;;  %v941_v61 = vsel %vm388_vm0, %v937_v46, %v939_v44 }
 0x45b   : > { %v2460_v49 = vsel %vm388_vm0, %v1162_v47, %v1164_v45  ;;  %v2463_v51 = vsel %vm388_vm0, 0, %v1162_v47  ;;  %v2509_v62 = vsel %vm395_vm1, %v941_v61, 0 }
 0x45c   : > { %1240 = vrot.lane.b32.xlu0 %v2460_v49, %s2091_s23  ;;  %1238 = vrot.lane.b32.xlu1 %v2463_v51, %s2091_s23  ;;  %v1180_v60 = vrot.slane %v2460_v49, 4  ;;  %v1179_v0 = vrot.slane %v2463_v51, 4 }
 0x45d   : > { %v2469_v53 = vpop.permute.xlu1 %934 }
 0x45e   : > { %v944_v57 = vsel %vm388_vm0, 0, %v2469_v53  ;;  %v2491_v58 = vsel %vm388_vm0, %v2469_v53, %v937_v46 }
 0x460   : > { %1224 = vrot.lane.b32.xlu0 %v2460_v49, %s2092_s24 }
 0x461   : > { %v1166_v54 = vpop.permute.xlu1 %1165 }
 0x462   : > { %v1168_v55 = vsel %vm388_vm0, %v1164_v45, %v1166_v54 }
 0x463   : > { %v2475_v56 = vsel %vm395_vm1, %v1168_v55, 0 }
 0x464   : > { %1242 = vrot.lane.b32.xlu1 %v2475_v56, %s2091_s23  ;;  %1008 = vrot.lane.b32.xlu0 %v944_v57, %s2092_s24  ;;  %v1181_v63 = vrot.slane %v2475_v56, 4 }
 0x468   : > { %1226 = vrot.lane.b32.xlu1 %v2475_v56, %s2092_s24  ;;  %986 = vrot.lane.b32.xlu0 %v944_v57, %s2093_s25 }
 0x46c   : > { %1019 = vrot.lane.b32.xlu1 %v944_v57, %s2095_s27  ;;  %964 = vrot.lane.b32.xlu0 %v944_v57, %s2094_s26 }
 0x470   : > { %997 = vrot.lane.b32.xlu1 %v944_v57, %s2096_s28  ;;  %1030 = vrot.lane.b32.xlu0 %v944_v57, %s2091_s23 }
 0x474   : > { %975 = vrot.lane.b32.xlu1 %v944_v57, %s2097_s29  ;;  %1010 = vrot.lane.b32.xlu0 %v2491_v58, %s2092_s24 }
 0x478   : > { %953 = vrot.lane.b32.xlu1 %v944_v57, %s2100_s30  ;;  %988 = vrot.lane.b32.xlu0 %v2491_v58, %s2093_s25 }
 0x47c   : > { %1021 = vrot.lane.b32.xlu1 %v2491_v58, %s2095_s27  ;;  %966 = vrot.lane.b32.xlu0 %v2491_v58, %s2094_s26 }
 0x480   : > { %999 = vrot.lane.b32.xlu1 %v2491_v58, %s2096_s28  ;;  %1032 = vrot.lane.b32.xlu0 %v2491_v58, %s2091_s23 }
 0x484   : > { %977 = vrot.lane.b32.xlu1 %v2491_v58, %s2097_s29  ;;  %1023 = vrot.lane.b32.xlu0 %v2509_v62, %s2095_s27 }
 0x488   : > { %955 = vrot.lane.b32.xlu1 %v2491_v58, %s2100_s30  ;;  %1232 = vrot.lane.b32.xlu0 %v1180_v60, %s2095_s27 }
 0x48c   : > { %1012 = vrot.lane.b32.xlu1 %v2509_v62, %s2092_s24  ;;  %1001 = vrot.lane.b32.xlu0 %v2509_v62, %s2096_s28 }
 0x490   : > { %1234 = vrot.lane.b32.xlu1 %v1181_v63, %s2095_s27  ;;  %1222 = vrot.lane.b32.xlu0 %v2463_v51, %s2092_s24 }
 0x494   : > { %990 = vrot.lane.b32.xlu1 %v2509_v62, %s2093_s25  ;;  %979 = vrot.lane.b32.xlu0 %v2509_v62, %s2097_s29 }
 0x498   : > { %1230 = vrot.lane.b32.xlu1 %v1179_v0, %s2095_s27  ;;  %1208 = vrot.lane.b32.xlu0 %v2460_v49, %s2093_s25 }
 0x49c   : > { %968 = vrot.lane.b32.xlu1 %v2509_v62, %s2094_s26  ;;  %957 = vrot.lane.b32.xlu0 %v2509_v62, %s2100_s30 }
 0x4a0   : > { %1210 = vrot.lane.b32.xlu1 %v2475_v56, %s2093_s25  ;;  %1216 = vrot.lane.b32.xlu0 %v1180_v60, %s2096_s28 }
 0x4a4   : > { %1218 = vrot.lane.b32.xlu1 %v1181_v63, %s2096_s28  ;;  %1206 = vrot.lane.b32.xlu0 %v2463_v51, %s2093_s25 }
 0x4a8   : > { %1034 = vrot.lane.b32.xlu1 %v2509_v62, %s2091_s23  ;;  %1192 = vrot.lane.b32.xlu0 %v2460_v49, %s2094_s26 }
 0x4ac   : > { %1214 = vrot.lane.b32.xlu1 %v1179_v0, %s2096_s28  ;;  %1200 = vrot.lane.b32.xlu0 %v1180_v60, %s2097_s29 }
 0x4b0   : > { %1194 = vrot.lane.b32.xlu1 %v2475_v56, %s2094_s26  ;;  %1190 = vrot.lane.b32.xlu0 %v2463_v51, %s2094_s26 }
 0x4b4   : > { %1202 = vrot.lane.b32.xlu1 %v1181_v63, %s2097_s29  ;;  %1184 = vrot.lane.b32.xlu0 %v1180_v60, %s2100_s30 }
 0x4b8   : > { %1198 = vrot.lane.b32.xlu1 %v1179_v0, %s2097_s29  ;;  %1182 = vrot.lane.b32.xlu0 %v1179_v0, %s2100_s30 }
 0x4bc   : > { %1186 = vrot.lane.b32.xlu1 %v1181_v63, %s2100_s30  ;;  %1299 = vperm.xlu0 %2069, %v2243_v16  }
 0x4c0   : > { %1294 = vperm.xlu1 %2068, %v2248_v17  }
 0x4ce   : > { %v2575_v9 = vpop.permute.xlu0 %1240  ;;  %v2577_v10 = vpop.permute.xlu1 %1238 }
 0x4d2   : > { %v2579_v12 = vpop.permute.xlu0 %1224 }
 0x4d6   : > { %v2581_v11 = vpop.permute.xlu1 %1242  ;;  %v1009_v13 = vpop.permute.xlu0 %1008 }
 0x4da   : > { %v2583_v14 = vpop.permute.xlu1 %1226  ;;  %v987_v18 = vpop.permute.xlu0 %986 }
 0x4de   : > { %v1020_v19 = vpop.permute.xlu1 %1019  ;;  %v965_v20 = vpop.permute.xlu0 %964 }
 0x4e2   : > { %v998_v7 = vpop.permute.xlu1 %997  ;;  %v2585_v22 = vpop.permute.xlu0 %1030 }
 0x4e6   : > { %v976_v16 = vpop.permute.xlu1 %975  ;;  %v1011_v23 = vpop.permute.xlu0 %1010 }
 0x4e7   : > { %v1014_v38 = vsel %vm458_vm6, %v1009_v13, %v1011_v23 }
 0x4ea   : > { %v954_v17 = vpop.permute.xlu1 %953  ;;  %v989_v8 = vpop.permute.xlu0 %988 }
 0x4eb   : > { %v992_v47 = vsel %vm440_vm8, %v987_v18, %v989_v8 }
 0x4ee   : > { %v1022_v24 = vpop.permute.xlu1 %1021  ;;  %v967_v25 = vpop.permute.xlu0 %966 }
 0x4ef   : > { %v1025_v31 = vsel %vm467_vm5, %v1020_v19, %v1022_v24  ;;  %v970_v13 = vsel %vm422_vm10, %v965_v20, %v967_v25 }
 0x4f2   : > { %v1000_v26 = vpop.permute.xlu1 %999  ;;  %v2587_v27 = vpop.permute.xlu0 %1032 }
 0x4f3   : > { %v1003_v43 = vsel %vm449_vm7, %v998_v7, %v1000_v26 }
 0x4f6   : > { %v978_v28 = vpop.permute.xlu1 %977  ;;  %v1024_v29 = vpop.permute.xlu0 %1023 }
 0x4f7   : > { %1101 = vmatpush1.bf16.msra.mxu1 %v1024_v29  ;;  %v1026_v30 = vsel %vm467_vm5, %v1022_v24, %v1024_v29  ;;  %v981_v61 = vsel %vm431_vm9, %v976_v16, %v978_v28 }
 0x4f8   : > { %1059 = vmatprep.subr.bf16.mxu0 %v1026_v30  ;;  %1102 = vmatprep.subr.bf16.mxu1 %v2099_v15 }
 0x4f9   : > { %1060 = vmatpush1.bf16.msra.mxu0 %v1025_v31 }
 0x4fa   : > { %v956_v32 = vpop.permute.xlu1 %955  ;;  %v2592_v33 = vpop.permute.xlu0 %1232 }
 0x4fb   : > { %v959_v16 = vsel %vm413_vm11, %v954_v17, %v956_v32 }
 0x4fe   : > { %v1013_v35 = vpop.permute.xlu1 %1012  ;;  %v1002_v36 = vpop.permute.xlu0 %1001 }
 0x4ff   : > { %1103 = vmatpush1.bf16.msra.mxu1 %v1013_v35  ;;  %v1015_v37 = vsel %vm458_vm6, %v1011_v23, %v1013_v35  ;;  %v1004_v39 = vsel %vm449_vm7, %v1000_v26, %v1002_v36 }
 0x500   : > { %1061 = vmatprep.subr.bf16.mxu0 %v1015_v37  ;;  %1104 = vmatprep.subr.bf16.mxu1 %v2099_v15 }
 0x501   : > { %1062 = vmatpush1.bf16.msra.mxu0 %v1014_v38 }
 0x502   : > { %1063 = vmatprep.subr.bf16.mxu0 %v1004_v39  ;;  %v2598_v40 = vpop.permute.xlu1 %1234  ;;  %v2600_v42 = vpop.permute.xlu0 %1222 }
 0x503   : > { %1105 = vmatpush1.bf16.msra.mxu1 %v1002_v36 }
 0x504   : > { %1106 = vmatprep.subr.bf16.mxu1 %v2099_v15 }
 0x505   : > { %1064 = vmatpush1.bf16.msra.mxu0 %v1003_v43 }
 0x506   : > { %v991_v44 = vpop.permute.xlu1 %990  ;;  %v980_v45 = vpop.permute.xlu0 %979 }
 0x507   : > { %1107 = vmatpush1.bf16.msra.mxu1 %v991_v44  ;;  %v993_v46 = vsel %vm440_vm8, %v989_v8, %v991_v44  ;;  %v982_v54 = vsel %vm431_vm9, %v978_v28, %v980_v45 }
 0x508   : > { %1065 = vmatprep.subr.bf16.mxu0 %v993_v46  ;;  %1108 = vmatprep.subr.bf16.mxu1 %v2099_v15 }
 0x509   : > { %1066 = vmatpush1.bf16.msra.mxu0 %v992_v47 }
 0x50a   : > { %1067 = vmatprep.subr.bf16.mxu0 %v982_v54  ;;  %v1231_v55 = vpop.permute.xlu1 %1230  ;;  %v2608_v57 = vpop.permute.xlu0 %1208 }
 0x50b   : > { %1109 = vmatpush1.bf16.msra.mxu1 %v980_v45  ;;  %v1236_v28 = vsel %vm467_vm5, %v1231_v55, %v2592_v33 }
 0x50c   : > { %1110 = vmatprep.subr.bf16.mxu1 %v2099_v15 }
 0x50d   : > { %1068 = vmatpush1.bf16.msra.mxu0 %v981_v61 }
 0x50e   : > { %v969_v60 = vpop.permute.xlu1 %968  ;;  %v958_v63 = vpop.permute.xlu0 %957 }
 0x50f   : > { %1111 = vmatpush1.bf16.msra.mxu1 %v969_v60  ;;  %v971_v0 = vsel %vm422_vm10, %v967_v25, %v969_v60  ;;  %v960_v18 = vsel %vm413_vm11, %v956_v32, %v958_v63  ;;  %v1237_v25 = vsel %vm467_vm5, %v2592_v33, %v2598_v40  ;;  %v1228_v32 = vsel %vm458_vm6, %v2600_v42, %v2579_v12 }
 0x510   : > { %1069 = vmatprep.subr.bf16.mxu0 %v971_v0  ;;  %1112 = vmatprep.subr.bf16.mxu1 %v2099_v15 }
 0x511   : > { %1070 = vmatpush1.bf16.msra.mxu0 %v970_v13 }
 0x512   : > { %1071 = vmatprep.subr.bf16.mxu0 %v960_v18  ;;  %v1211_v19 = vpop.permute.xlu1 %1210  ;;  %v1217_v7 = vpop.permute.xlu0 %1216  ;;  %v2080_v18 = vld [vmem:[%s2933_s2] sm:$0xff]  }
 0x513   : > { %1113 = vmatpush1.bf16.msra.mxu1 %v958_v63  ;;  %v1213_v33 = vsel %vm440_vm8, %v2608_v57, %v1211_v19 }
 0x514   : > { %1114 = vmatprep.subr.bf16.mxu1 %v2099_v15 }
 0x515   : > { %1072 = vmatpush1.bf16.msra.mxu0 %v959_v16 }
 0x516   : > { %1073 = vmatprep.subr.bf16.mxu0 %v2491_v58  ;;  %v1219_v23 = vpop.permute.xlu1 %1218  ;;  %v1207_v8 = vpop.permute.xlu0 %1206  ;;  %v1036_v58 = vsel %vm476_vm3, %v2585_v22, %v2587_v27  ;;  %v1317_v22 = vsel %vm2949_vm15, %v2581_v11, 0  ;;  %vm2953_vm15 = vmmov %vm2951_vm13 }
 0x517   : > { %1115 = vmatpush1.bf16.msra.mxu1 %v2509_v62  ;;  %v1244_v62 = vsel %vm476_vm3, %v2577_v10, %v2575_v9  ;;  %v1290_v29 = vsel %vm2953_vm15, %v2583_v14, %v2598_v40  ;;  %v1221_v30 = vsel %vm449_vm7, %v1217_v7, %v1219_v23 }
 0x518   : > { %1130 = vmatprep.subr.bf16.mxu1 %v2099_v15  ;;  %v1311_v10 = vsel %vm2951_vm13, %v1244_v62, 0 }
 0x519   : > { %1980 = vmatpush1.bf16.msk.msra.mxu0 %vm2420_vm4, %v2469_v53  ;;  %v1245_v53 = vsel %vm476_vm3, %v2575_v9, %v2581_v11  ;;  %v1229_v9 = vsel %vm458_vm6, %v2579_v12, %v2583_v14  ;;  %v1212_v12 = vsel %vm440_vm8, %v1207_v8, %v2608_v57 }
 0x51a   : > { %v1035_v20 = vpop.permute.xlu1 %1034  ;;  %v1193_v24 = vpop.permute.xlu0 %1192 }
 0x51b   : > { %1131 = vmatpush2.bf16.msra.mxu1 %v1035_v20  ;;  %v1037_v17 = vsel %vm476_vm3, %v2587_v27, %v1035_v20 }
 0x51c   : > { %1089 = vmatprep.subr.bf16.mxu0 %v1037_v17  ;;  %2033 = vmatprep.subr.bf16.mxu1 %v2090_v4 }
 0x51d   : > { %1090 = vmatpush2.bf16.msra.mxu0 %v1036_v58 }
 0x51e   : > { %1989 = vmatprep.subr.msk.bf16.mxu0 %vm2948_vm14, %v1245_v53  ;;  %v1215_v26 = vpop.permute.xlu1 %1214  ;;  %1133 = vmatmul.mubr.bf16.vlgmr.msra.gmra.mxu1 %v2540_v1  ;;  %v1201_v27 = vpop.permute.xlu0 %1200  ;;  %vm2952_vm14 = vmmov %vm2951_vm13 }
 0x51f   : > { %2034 = vmatpush3.bf16.msra.mxu1 %v1317_v22  ;;  %2043 = vmatprep.mubr.msk.bf16.mxu1 %vm2950_vm12, %v2090_v4  ;;  %v1286_v11 = vsel %vm2952_vm14, %v1229_v9, %v1237_v25  ;;  %vm2954_vm12 = vmmov %vm2951_vm13  ;;  %v1220_v37 = vsel %vm449_vm7, %v1215_v26, %v1217_v7 }
 0x520   : > { %1092 = vmatmul.mubr.bf16.vlgmr.msra.gmra.mxu0 %v2540_v1  ;;  %2035 = vmatprep.subr.bf16.mxu1 %v2090_v4  ;;  %v1282_v36 = vsel %vm2954_vm12, %v1228_v32, %v1236_v28  ;;  %vm2955_vm13 = vmmov %vm2954_vm12 }
 0x521   : > { %1326 = vmatpush1.bf16.msra.mxu0 %v1311_v10  ;;  %1351 = vmatprep.mubr.bf16.mxu0 %v2099_v15  ;;  %v1274_v14 = vsel %vm2955_vm13, %v1213_v33, %v1221_v30  ;;  %vm2956_vm14 = vmmov %vm2954_vm12 }
 0x522   : > { %1327 = vmatprep.subr.bf16.mxu0 %v1286_v11  ;;  %v1195_v31 = vpop.permute.xlu1 %1194  ;;  %v1191_v35 = vpop.permute.xlu0 %1190  ;;  %v1278_v38 = vsel %vm2956_vm14, %v1211_v19, %v1219_v23  ;;  %vm2957_vm15 = vmmov %vm2954_vm12 }
 0x523   : > { %2036 = vmatpush3.bf16.msra.mxu1 %v1290_v29  ;;  %v1197_v40 = vsel %vm422_vm10, %v1193_v24, %v1195_v31  ;;  %v1270_v44 = vsel %vm2957_vm15, %v1212_v12, %v1220_v37  ;;  %vm2958_vm13 = vmmov %vm2954_vm12  ;;  %v1196_v54 = vsel %vm422_vm10, %v1191_v35, %v1193_v24 }
 0x524   : > { %2037 = vmatprep.subr.bf16.mxu1 %v2090_v4  ;;  %vm2959_vm14 = vmmov %vm2954_vm12 }
 0x525   : > { %1328 = vmatpush1.bf16.msra.mxu0 %v1282_v36  ;;  %vm2960_vm15 = vmmov %vm2954_vm12 }
 0x526   : > { %1329 = vmatprep.subr.bf16.mxu0 %v1274_v14  ;;  %v1203_v39 = vpop.permute.xlu1 %1202  ;;  %v1185_v42 = vpop.permute.xlu0 %1184 }
 0x527   : > { %v1205_v43 = vsel %vm431_vm9, %v1201_v27, %v1203_v39  ;;  %2038 = vmatpush3.bf16.msra.mxu1 %v1278_v38  ;;  %v1266_v46 = vsel %vm2958_vm13, %v1195_v31, %v1203_v39  ;;  %vm2961_vm13 = vmmov %vm2954_vm12 }
 0x528   : > { %v1262_v45 = vsel %vm2954_vm12, %v1197_v40, %v1205_v43  ;;  %2039 = vmatprep.subr.bf16.mxu1 %v2090_v4 }
 0x529   : > { %1330 = vmatpush1.bf16.msra.mxu0 %v1270_v44 }
 0x52a   : > { %1331 = vmatprep.subr.bf16.mxu0 %v1262_v45  ;;  %v1199_v47 = vpop.permute.xlu1 %1198  ;;  %v1183_v55 = vpop.permute.xlu0 %1182 }
 0x52b   : > { %v1204_v57 = vsel %vm431_vm9, %v1199_v47, %v1201_v27  ;;  %2040 = vmatpush3.bf16.msra.mxu1 %v1266_v46  ;;  %v1188_v60 = vsel %vm413_vm11, %v1183_v55, %v1185_v42 }
 0x52c   : > { %v1258_v61 = vsel %vm2959_vm14, %v1196_v54, %v1204_v57  ;;  %2041 = vmatprep.subr.bf16.mxu1 %v2090_v4  ;;  %v1247_v4 = vsel %vm2961_vm13, %v2463_v51, %v1188_v60  ;;  %vm2962_vm14 = vcmask 588800  }
 0x52d   : > { %1332 = vmatpush1.bf16.msra.mxu0 %v1258_v61 }
 0x52e   : > { %v1187_v63 = vpop.permute.xlu1 %1186 }
 0x52f   : > { %v1189_v0 = vsel %vm413_vm11, %v1185_v42, %v1187_v63  ;;  %v1254_v13 = vsel %vm2960_vm15, %v2475_v56, %v1187_v63  ;;  %vm2963_vm15 = vmmov %vm2962_vm14 }
 0x530   : > { %2042 = vmatpush3.bf16.msra.mxu1 %v1254_v13  ;;  %v1251_v19 = vsel %vm2954_vm12, %v2460_v49, %v1189_v0 }
 0x531   : > { %1333 = vmatprep.subr.bf16.mxu0 %v1251_v19  ;;  %1609 = vmatprep.subr.bf16.mxu1 %v2099_v15 }
 0x532   : > { %1334 = vmatpush1.bf16.msra.mxu0 %v1247_v4 }
 0x533   : > { %2044 = vmatmul.mubr.msk.bf16.vlgmr.msra.gmra.mxu1 %vm2962_vm14, %v2080_v18 }
 0x534   : > { %1997 = vmatprep.mubr.msk.bf16.mxu1 %vm2945_vm2, %v2364_v3 }
 0x535   : > { %1990 = vmatmul.mubr.msk.bf16.vlgmr.msra.gmra.mxu0 %vm2963_vm15, %v2080_v18 }
 0x536   : > { %1996 = vmatprep.mubr.msk.bf16.mxu0 %vm2945_vm2, %v2364_v3 }
 0x537   : > { %v1300_v22 = vpop.permute.xlu0 %1299 }
 0x53b   : > { %v1295_v24 = vpop.permute.xlu1 %1294 }
 0x5de   : > { %v2699_v56 = vpop.f32.mrf.mxu1 }
 0x5e0   : > { %v2701_v49 = vpop.f32.mrf.mxu0  ;;  %v1136_v7 = vpop.f32.mrf.mxu1 }
 0x5e2   : > { %v2703_v16 = vpop.f32.mrf.mxu0  ;;  %v1137_v51 = vpop.f32.mrf.mxu1 }
 0x5e4   : > { %v1097_v23 = vpop.f32.mrf.mxu0  ;;  %v1138_v8 = vpop.f32.mrf.mxu1 }
 0x5e6   : > { %v1098_v20 = vpop.f32.mrf.mxu0 }
 0x5f3   : > { %v1396_v17 = vpop.f32.mrf.mxu1 }
 0x5f4   : > { %v1397_v58 = vadd.f32 %v1396_v17, %v1295_v24 }
 0x5f5   : > { %v1353_v62 = vpop.f32.mrf.mxu0  ;;  %v2045_v53 = vpop.f32.mrf.mxu1 }
 0x5f6   : > { %v1413_v25 = vmul.f32 %v1397_v58, %v2296_v21  ;;  %vm1406_vm12 = vcmp.ge.f32.partialorder %v1397_v58, 0.0  ;;  %v1354_v10 = vadd.f32 %v1353_v62, %v1295_v24 }
 0x5f7   : > { %v1355_v3 = vpop.f32.mrf.mxu0  ;;  %v1399_v26 = vpop.f32.mrf.mxu1 }
 0x5f8   : > { %v1356_v27 = vadd.f32 %v1355_v3, %v1295_v24  ;;  %v1400_v9 = vadd.f32 %v1399_v26, %v1300_v22  ;;  %v1419_v29 = vsel %vm1406_vm12, %v1397_v58, %v1413_v25  ;;  %v1411_v14 = vmul.f32 %v1354_v10, %v2296_v21 }
 0x5f9   : > { %v1357_v28 = vpop.f32.mrf.mxu0  ;;  %v2046_v11 = vpop.f32.mrf.mxu1  ;;  %v1425_v37 = vmul.f32 %v1419_v29, %v2311_v48  ;;  %vm1404_vm2 = vcmp.ge.f32.partialorder %v1354_v10, 0.0 }
 0x5fa   : > { %v1412_v30 = vmul.f32 %v1356_v27, %v2296_v21  ;;  %v1358_v31 = vadd.f32 %v1357_v28, %v1300_v22  ;;  %vm1405_vm13 = vcmp.ge.f32.partialorder %v1356_v27, 0.0  ;;  %vm1409_vm14 = vcmp.ge.f32.partialorder %v1400_v9, 0.0 }
 0x5fb   : > { %v1416_v32 = vmul.f32 %v1400_v9, %v2296_v21  ;;  %v1359_v35 = vpop.f32.mrf.mxu0  ;;  %v1417_v47 = vsel %vm1404_vm2, %v1354_v10, %v1411_v14  ;;  %vm2964_vm2 = vcmask 130048  }
 0x5fc   : > { %v1414_v33 = vmul.f32 %v1358_v31, %v2296_v21  ;;  %v1360_v36 = vadd.f32 %v1359_v35, %v1300_v22  ;;  %vm1407_vm15 = vcmp.ge.f32.partialorder %v1358_v31, 0.0  ;;  %v1418_v39 = vsel %vm1405_vm13, %v1356_v27, %v1412_v30  ;;  %vm2965_vm13 = vmmov %vm2964_vm2 }
 0x5fd   : > { %v1422_v38 = vsel %vm1409_vm14, %v1400_v9, %v1416_v32  ;;  %v1424_v45 = vmul.f32 %v1418_v39, %v2307_v41  ;;  %v1423_v57 = vmul.f32 %v1417_v47, %v2303_v34 }
 0x5fe   : > { %v1428_v12 = vmul.f32 %v1422_v38, %v2311_v48  ;;  %vm1408_vm12 = vcmp.ge.f32.partialorder %v1360_v36, 0.0  ;;  %v1415_v40 = vmul.f32 %v1360_v36, %v2296_v21  ;;  %v1420_v42 = vsel %vm1407_vm15, %v1358_v31, %v1414_v33 }
 0x5ff   : > { %v1426_v54 = vmul.f32 %v1420_v42, %v2303_v34 }
 0x600   : > { %v1421_v43 = vsel %vm1408_vm12, %v1360_v36, %v1415_v40  ;;  %v1431_v44 = vpack.c.bf16 %v1428_v12, %v1425_v37 }
 0x601   : > { %v1427_v46 = vmul.f32 %v1421_v43, %v2307_v41  ;;  %v1429_v61 = vpack.c.bf16 %v1426_v54, %v1423_v57 }
 0x602   : > { %1439 = vrot.lane.b32.xlu0 %v1431_v44, %s2089_s22 }
 0x603   : > { %v1430_v55 = vpack.c.bf16 %v1427_v46, %v1424_v45 }
 0x605   : > { %1437 = vrot.lane.b32.xlu1 %v1430_v55, %s2089_s22 }
 0x609   : > { %1435 = vrot.lane.b32.xlu1 %v1429_v61, %s2089_s22 }
 0x674   : > { %v1440_v13 = vpop.permute.xlu0 %1439 }
 0x677   : > { %v1438_v21 = vpop.permute.xlu1 %1437 }
 0x678   : > { %v1442_v18 = vsel %vm388_vm0, %v1438_v21, %v1440_v13 }
 0x679   : > { %v2739_v19 = vsel %vm395_vm1, %v1442_v18, 0 }
 0x67b   : > { %v2720_v60 = vpop.permute.xlu1 %1435 }
 0x67c   : > { %v1445_v63 = vsel %vm388_vm0, 0, %v2720_v60  ;;  %v2728_v0 = vsel %vm388_vm0, %v2720_v60, %v1438_v21 }
 0x67d   : > { %1511 = vrot.lane.b32.xlu1 %v1445_v63, %s2092_s24  ;;  %1522 = vrot.lane.b32.xlu0 %v1445_v63, %s2095_s27 }
 0x681   : > { %1500 = vrot.lane.b32.xlu0 %v1445_v63, %s2096_s28  ;;  %1513 = vrot.lane.b32.xlu1 %v2728_v0, %s2092_s24 }
 0x685   : > { %1491 = vrot.lane.b32.xlu1 %v2728_v0, %s2093_s25  ;;  %1524 = vrot.lane.b32.xlu0 %v2728_v0, %s2095_s27 }
 0x689   : > { %1526 = vrot.lane.b32.xlu1 %v2739_v19, %s2095_s27  ;;  %1502 = vrot.lane.b32.xlu0 %v2728_v0, %s2096_s28 }
 0x68d   : > { %1489 = vrot.lane.b32.xlu1 %v1445_v63, %s2093_s25  ;;  %1515 = vrot.lane.b32.xlu0 %v2739_v19, %s2092_s24 }
 0x691   : > { %1504 = vrot.lane.b32.xlu1 %v2739_v19, %s2096_s28  ;;  %1480 = vrot.lane.b32.xlu0 %v2728_v0, %s2097_s29 }
 0x695   : > { %1469 = vrot.lane.b32.xlu1 %v2728_v0, %s2094_s26  ;;  %1493 = vrot.lane.b32.xlu0 %v2739_v19, %s2093_s25 }
 0x699   : > { %1482 = vrot.lane.b32.xlu1 %v2739_v19, %s2097_s29  ;;  %1478 = vrot.lane.b32.xlu0 %v1445_v63, %s2097_s29 }
 0x69d   : > { %1467 = vrot.lane.b32.xlu1 %v1445_v63, %s2094_s26  ;;  %1471 = vrot.lane.b32.xlu0 %v2739_v19, %s2094_s26 }
 0x6a1   : > { %1460 = vrot.lane.b32.xlu1 %v2739_v19, %s2100_s30  ;;  %1458 = vrot.lane.b32.xlu0 %v2728_v0, %s2100_s30 }
 0x6a5   : > { %1535 = vrot.lane.b32.xlu1 %v2728_v0, %s2091_s23  ;;  %1456 = vrot.lane.b32.xlu0 %v1445_v63, %s2100_s30 }
 0x6a9   : > { %1533 = vrot.lane.b32.xlu1 %v1445_v63, %s2091_s23  ;;  %1537 = vrot.lane.b32.xlu0 %v2739_v19, %s2091_s23 }
 0x6ad   : > { %1551 = vperm.xlu1 %2068, %v2386_v5   ;;  %1546 = vperm.xlu0 %2069, %v2391_v6  }
 0x6ef   : > { %v1512_v4 = vpop.permute.xlu1 %1511  ;;  %v1523_v7 = vpop.permute.xlu0 %1522 }
 0x6f3   : > { %v1501_v51 = vpop.permute.xlu0 %1500  ;;  %v1514_v23 = vpop.permute.xlu1 %1513 }
 0x6f4   : > { %v1517_v25 = vsel %vm458_vm6, %v1512_v4, %v1514_v23 }
 0x6f7   : > { %v1492_v8 = vpop.permute.xlu1 %1491  ;;  %v1525_v20 = vpop.permute.xlu0 %1524 }
 0x6f8   : > { %v1528_v62 = vsel %vm467_vm5, %v1523_v7, %v1525_v20 }
 0x6fb   : > { %v1527_v24 = vpop.permute.xlu1 %1526  ;;  %v1503_v17 = vpop.permute.xlu0 %1502 }
 0x6fc   : > { %1610 = vmatpush1.bf16.msra.mxu1 %v1527_v24  ;;  %v1529_v58 = vsel %vm467_vm5, %v1525_v20, %v1527_v24  ;;  %v1506_v27 = vsel %vm449_vm7, %v1501_v51, %v1503_v17 }
 0x6fd   : > { %1566 = vmatprep.subr.bf16.mxu0 %v1529_v58  ;;  %1611 = vmatprep.subr.bf16.mxu1 %v2099_v15 }
 0x6fe   : > { %1567 = vmatpush1.bf16.msra.mxu0 %v1528_v62 }
 0x6ff   : > { %v1490_v5 = vpop.permute.xlu1 %1489  ;;  %v1516_v53 = vpop.permute.xlu0 %1515 }
 0x700   : > { %1612 = vmatpush1.bf16.msra.mxu1 %v1516_v53  ;;  %v1518_v6 = vsel %vm458_vm6, %v1514_v23, %v1516_v53  ;;  %v1495_v11 = vsel %vm440_vm8, %v1490_v5, %v1492_v8 }
 0x701   : > { %1568 = vmatprep.subr.bf16.mxu0 %v1518_v6  ;;  %1613 = vmatprep.subr.bf16.mxu1 %v2099_v15 }
 0x702   : > { %1569 = vmatpush1.bf16.msra.mxu0 %v1517_v25 }
 0x703   : > { %v1505_v3 = vpop.permute.xlu1 %1504  ;;  %v1481_v26 = vpop.permute.xlu0 %1480 }
 0x704   : > { %1614 = vmatpush1.bf16.msra.mxu1 %v1505_v3  ;;  %v1507_v22 = vsel %vm449_vm7, %v1503_v17, %v1505_v3 }
 0x705   : > { %1570 = vmatprep.subr.bf16.mxu0 %v1507_v22  ;;  %1615 = vmatprep.subr.bf16.mxu1 %v2099_v15 }
 0x706   : > { %1571 = vmatpush1.bf16.msra.mxu0 %v1506_v27 }
 0x707   : > { %v1470_v10 = vpop.permute.xlu1 %1469  ;;  %v1494_v9 = vpop.permute.xlu0 %1493 }
 0x708   : > { %1616 = vmatpush1.bf16.msra.mxu1 %v1494_v9  ;;  %v1496_v28 = vsel %vm440_vm8, %v1492_v8, %v1494_v9 }
 0x709   : > { %1572 = vmatprep.subr.bf16.mxu0 %v1496_v28  ;;  %1617 = vmatprep.subr.bf16.mxu1 %v2099_v15 }
 0x70a   : > { %1573 = vmatpush1.bf16.msra.mxu0 %v1495_v11 }
 0x70b   : > { %v1483_v29 = vpop.permute.xlu1 %1482  ;;  %v1479_v30 = vpop.permute.xlu0 %1478 }
 0x70c   : > { %v1484_v31 = vsel %vm431_vm9, %v1479_v30, %v1481_v26  ;;  %1618 = vmatpush1.bf16.msra.mxu1 %v1483_v29  ;;  %v1485_v32 = vsel %vm431_vm9, %v1481_v26, %v1483_v29 }
 0x70d   : > { %1574 = vmatprep.subr.bf16.mxu0 %v1485_v32  ;;  %1619 = vmatprep.subr.bf16.mxu1 %v2099_v15 }
 0x70e   : > { %1575 = vmatpush1.bf16.msra.mxu0 %v1484_v31 }
 0x70f   : > { %v1468_v35 = vpop.permute.xlu1 %1467  ;;  %v1472_v33 = vpop.permute.xlu0 %1471 }
 0x710   : > { %v1473_v36 = vsel %vm422_vm10, %v1468_v35, %v1470_v10  ;;  %1620 = vmatpush1.bf16.msra.mxu1 %v1472_v33  ;;  %v1474_v37 = vsel %vm422_vm10, %v1470_v10, %v1472_v33 }
 0x711   : > { %1576 = vmatprep.subr.bf16.mxu0 %v1474_v37  ;;  %1621 = vmatprep.subr.bf16.mxu1 %v2099_v15  ;;  %v1698_v37 = vld [vmem:[%s2940_s9] sm:$0xf] }
 0x712   : > { %1577 = vmatpush1.bf16.msra.mxu0 %v1473_v36 }
 0x713   : > { %v1461_v14 = vpop.permute.xlu1 %1460  ;;  %v1459_v38 = vpop.permute.xlu0 %1458 }
 0x714   : > { %1622 = vmatpush1.bf16.msra.mxu1 %v1461_v14  ;;  %v1463_v39 = vsel %vm413_vm11, %v1459_v38, %v1461_v14  ;;  %v950_v14 = vld [vmem:[%s2940_s9] sm:$0xf] }
 0x715   : > { %1578 = vmatprep.subr.bf16.mxu0 %v1463_v39  ;;  %1623 = vmatprep.subr.bf16.mxu1 %v2099_v15 }
 0x717   : > { %v1536_v12 = vpop.permute.xlu1 %1535  ;;  %v1457_v40 = vpop.permute.xlu0 %1456 }
 0x718   : > { %v1462_v42 = vsel %vm413_vm11, %v1457_v40, %v1459_v38  ;;  %1624 = vmatpush1.bf16.msra.mxu1 %v2739_v19 }
 0x719   : > { %1579 = vmatpush1.bf16.msra.mxu0 %v1462_v42  ;;  %1639 = vmatprep.subr.bf16.mxu1 %v2099_v15 }
 0x71a   : > { %1580 = vmatprep.subr.bf16.mxu0 %v2728_v0 }
 0x71b   : > { %v1538_v43 = vpop.permute.xlu0 %1537  ;;  %v1534_v45 = vpop.permute.xlu1 %1533 }
 0x71c   : > { %1640 = vmatpush2.bf16.msra.mxu1 %v1538_v43  ;;  %v1540_v44 = vsel %vm476_vm3, %v1536_v12, %v1538_v43  ;;  %v1539_v46 = vsel %vm476_vm3, %v1534_v45, %v1536_v12 }
 0x71d   : > { %1995 = vmatpush1.bf16.msk.msra.mxu0 %vm2420_vm4, %v2720_v60  ;;  %1848 = vmatprep.subr.bf16.mxu1 %v2099_v15 }
 0x71e   : > { %1596 = vmatprep.subr.bf16.mxu0 %v1540_v44 }
 0x71f   : > { %1642 = vmatmul.mubr.bf16.vlgmr.msra.gmra.mxu1 %v2427_v52 }
 0x720   : > { %2002 = vmatprep.mubr.msk.bf16.mxu1 %vm2964_vm2, %v2546_v2 }
 0x721   : > { %1597 = vmatpush2.bf16.msra.mxu0 %v1539_v46 }
 0x724   : > { %1599 = vmatmul.mubr.bf16.vlgmr.msra.gmra.mxu0 %v2427_v52 }
 0x725   : > { %2001 = vmatprep.mubr.msk.bf16.mxu0 %vm2965_vm13, %v2546_v2 }
 0x728   : > { %v1547_v47 = vpop.permute.xlu0 %1546  ;;  %v1552_v21 = vpop.permute.xlu1 %1551 }
 0x7df   : > { %v1643_v54 = vpop.f32.mrf.mxu1 }
 0x7e0   : > { %v1644_v55 = vadd.f32 %v1643_v54, %v1547_v47 }
 0x7e1   : > { %v1645_v57 = vpop.f32.mrf.mxu1 }
 0x7e2   : > { %v1660_v61 = vmul.f32 %v1644_v55, %v2437_v59  ;;  %vm1653_vm14 = vcmp.ge.f32.partialorder %v1644_v55, 0.0 }
 0x7e3   : > { %v1646_v60 = vpop.f32.mrf.mxu1 }
 0x7e4   : > { %v1647_v63 = vadd.f32 %v1646_v60, %v1552_v21  ;;  %v1600_v0 = vpop.f32.mrf.mxu0  ;;  %v1666_v18 = vsel %vm1653_vm14, %v1644_v55, %v1660_v61 }
 0x7e5   : > { %v1648_v13 = vpop.f32.mrf.mxu1  ;;  %v1672_v51 = vmul.f32 %v1666_v18, %v2311_v48  ;;  %v1601_v8 = vadd.f32 %v1600_v0, %v1547_v47 }
 0x7e6   : > { %vm1656_vm15 = vcmp.ge.f32.partialorder %v1647_v63, 0.0  ;;  %v1663_v19 = vmul.f32 %v1647_v63, %v2437_v59  ;;  %v1602_v52 = vpop.f32.mrf.mxu0 }
 0x7e7   : > { %v1603_v4 = vadd.f32 %v1602_v52, %v1547_v47  ;;  %v1658_v53 = vmul.f32 %v1601_v8, %v2437_v59  ;;  %vm1651_vm14 = vcmp.ge.f32.partialorder %v1601_v8, 0.0 }
 0x7e8   : > { %v1669_v7 = vsel %vm1656_vm15, %v1647_v63, %v1663_v19  ;;  %v1604_v2 = vpop.f32.mrf.mxu0 }
 0x7e9   : > { %v1675_v23 = vmul.f32 %v1669_v7, %v2311_v48  ;;  %v1659_v20 = vmul.f32 %v1603_v4, %v2437_v59  ;;  %vm1652_vm12 = vcmp.ge.f32.partialorder %v1603_v4, 0.0  ;;  %v1605_v24 = vadd.f32 %v1604_v2, %v1552_v21 }
 0x7ea   : > { %v1606_v17 = vpop.f32.mrf.mxu0  ;;  %v1664_v10 = vsel %vm1651_vm14, %v1601_v8, %v1658_v53 }
 0x7eb   : > { %v1607_v58 = vadd.f32 %v1606_v17, %v1552_v21  ;;  %v1678_v62 = vpack.c.bf16 %v1675_v23, %v1672_v51  ;;  %vm1654_vm2 = vcmp.ge.f32.partialorder %v1605_v24, 0.0  ;;  %v1661_v5 = vmul.f32 %v1605_v24, %v2437_v59 }
 0x7ec   : > { %v1665_v6 = vsel %vm1652_vm12, %v1603_v4, %v1659_v20  ;;  %v1670_v11 = vmul.f32 %v1664_v10, %v2303_v34 }
 0x7ed   : > { %vm1655_vm13 = vcmp.ge.f32.partialorder %v1607_v58, 0.0  ;;  %v1662_v25 = vmul.f32 %v1607_v58, %v2437_v59  ;;  %1686 = vrot.lane.b32.xlu1 %v1678_v62, %s2089_s22  ;;  %v1667_v3 = vsel %vm1654_vm2, %v1605_v24, %v1661_v5  ;;  %v1671_v22 = vmul.f32 %v1665_v6, %v2307_v41 }
 0x7ee   : > { %v1673_v9 = vmul.f32 %v1667_v3, %v2303_v34 }
 0x7ef   : > { %v1668_v26 = vsel %vm1655_vm13, %v1607_v58, %v1662_v25 }
 0x7f0   : > { %v1674_v27 = vmul.f32 %v1668_v26, %v2307_v41  ;;  %v1676_v29 = vpack.c.bf16 %v1673_v9, %v1670_v11 }
 0x7f2   : > { %v1677_v28 = vpack.c.bf16 %v1674_v27, %v1671_v22 }
 0x7f4   : > { %1684 = vrot.lane.b32.xlu0 %v1677_v28, %s2089_s22 }
 0x7f8   : > { %1682 = vrot.lane.b32.xlu0 %v1676_v29, %s2089_s22 }
 0x85f   : > { %v1687_v35 = vpop.permute.xlu1 %1686 }
 0x866   : > { %v1685_v59 = vpop.permute.xlu0 %1684 }
 0x867   : > { %v1689_v33 = vsel %vm388_vm0, %v1685_v59, %v1687_v35 }
 0x868   : > { %v2844_v36 = vsel %vm395_vm1, %v1689_v33, 0 }
 0x86a   : > { %v2825_v30 = vpop.permute.xlu0 %1682 }
 0x86b   : > { %v1692_v31 = vsel %vm388_vm0, 0, %v2825_v30  ;;  %v2833_v32 = vsel %vm388_vm0, %v2825_v30, %v1685_v59  ;;  %vm1148_vm0 = vcmask 551936  }
 0x86c   : > { %1756 = vrot.lane.b32.xlu0 %v1692_v31, %s2092_s24  ;;  %1767 = vrot.lane.b32.xlu1 %v1692_v31, %s2095_s27 }
 0x870   : > { %1745 = vrot.lane.b32.xlu1 %v1692_v31, %s2096_s28  ;;  %1758 = vrot.lane.b32.xlu0 %v2833_v32, %s2092_s24 }
 0x874   : > { %1736 = vrot.lane.b32.xlu0 %v2833_v32, %s2093_s25  ;;  %1769 = vrot.lane.b32.xlu1 %v2833_v32, %s2095_s27 }
 0x878   : > { %1771 = vrot.lane.b32.xlu0 %v2844_v36, %s2095_s27  ;;  %1747 = vrot.lane.b32.xlu1 %v2833_v32, %s2096_s28 }
 0x87c   : > { %1734 = vrot.lane.b32.xlu0 %v1692_v31, %s2093_s25  ;;  %1760 = vrot.lane.b32.xlu1 %v2844_v36, %s2092_s24 }
 0x880   : > { %1749 = vrot.lane.b32.xlu0 %v2844_v36, %s2096_s28  ;;  %1725 = vrot.lane.b32.xlu1 %v2833_v32, %s2097_s29  ;;  %s368_s28 = scalar_lea.vmem %s2941_s10, %s2047_s7 }
 0x884   : > { %1714 = vrot.lane.b32.xlu0 %v2833_v32, %s2094_s26  ;;  %1738 = vrot.lane.b32.xlu1 %v2844_v36, %s2093_s25 }
 0x888   : > { %1727 = vrot.lane.b32.xlu0 %v2844_v36, %s2097_s29  ;;  %1723 = vrot.lane.b32.xlu1 %v1692_v31, %s2097_s29 }
 0x88c   : > { %1712 = vrot.lane.b32.xlu0 %v1692_v31, %s2094_s26  ;;  %1716 = vrot.lane.b32.xlu1 %v2844_v36, %s2094_s26 }
 0x890   : > { %1705 = vrot.lane.b32.xlu0 %v2844_v36, %s2100_s30  ;;  %1703 = vrot.lane.b32.xlu1 %v2833_v32, %s2100_s30 }
 0x894   : > { %1780 = vrot.lane.b32.xlu0 %v2833_v32, %s2091_s23  ;;  %1701 = vrot.lane.b32.xlu1 %v1692_v31, %s2100_s30 }
 0x898   : > { %1778 = vrot.lane.b32.xlu0 %v1692_v31, %s2091_s23  ;;  %1782 = vrot.lane.b32.xlu1 %v2844_v36, %s2091_s23 }
 0x89c   : > { %1791 = vperm.xlu0 %2069, %v1698_v37   ;;  %1043 = vperm.xlu1 %2068, %v950_v14  }
 0x8de   : > { %v1757_v38 = vpop.permute.xlu0 %1756  ;;  %v1768_v39 = vpop.permute.xlu1 %1767 }
 0x8e2   : > { %v1746_v12 = vpop.permute.xlu1 %1745  ;;  %v1759_v40 = vpop.permute.xlu0 %1758 }
 0x8e3   : > { %v1762_v61 = vsel %vm458_vm6, %v1757_v38, %v1759_v40 }
 0x8e6   : > { %v1737_v42 = vpop.permute.xlu0 %1736  ;;  %v1770_v43 = vpop.permute.xlu1 %1769 }
 0x8e7   : > { %v1773_v47 = vsel %vm467_vm5, %v1768_v39, %v1770_v43 }
 0x8ea   : > { %v1772_v44 = vpop.permute.xlu0 %1771  ;;  %v1748_v45 = vpop.permute.xlu1 %1747 }
 0x8eb   : > { %1849 = vmatpush1.bf16.msra.mxu1 %v1772_v44  ;;  %v1774_v46 = vsel %vm467_vm5, %v1770_v43, %v1772_v44  ;;  %v1751_v0 = vsel %vm449_vm7, %v1746_v12, %v1748_v45 }
 0x8ec   : > { %1807 = vmatprep.subr.bf16.mxu0 %v1774_v46  ;;  %1850 = vmatprep.subr.bf16.mxu1 %v2099_v15 }
 0x8ed   : > { %1808 = vmatpush1.bf16.msra.mxu0 %v1773_v47 }
 0x8ee   : > { %v1735_v54 = vpop.permute.xlu0 %1734  ;;  %v1761_v55 = vpop.permute.xlu1 %1760 }
 0x8ef   : > { %1851 = vmatpush1.bf16.msra.mxu1 %v1761_v55  ;;  %v1763_v57 = vsel %vm458_vm6, %v1759_v40, %v1761_v55  ;;  %v1740_v52 = vsel %vm440_vm8, %v1735_v54, %v1737_v42 }
 0x8f0   : > { %1809 = vmatprep.subr.bf16.mxu0 %v1763_v57  ;;  %1852 = vmatprep.subr.bf16.mxu1 %v2099_v15 }
 0x8f1   : > { %1810 = vmatpush1.bf16.msra.mxu0 %v1762_v61 }
 0x8f2   : > { %v1750_v21 = vpop.permute.xlu0 %1749  ;;  %v1726_v60 = vpop.permute.xlu1 %1725 }
 0x8f3   : > { %1853 = vmatpush1.bf16.msra.mxu1 %v1750_v21  ;;  %v1752_v63 = vsel %vm449_vm7, %v1748_v45, %v1750_v21 }
 0x8f4   : > { %1811 = vmatprep.subr.bf16.mxu0 %v1752_v63  ;;  %1854 = vmatprep.subr.bf16.mxu1 %v2099_v15 }
 0x8f5   : > { %1812 = vmatpush1.bf16.msra.mxu0 %v1751_v0 }
 0x8f6   : > { %v1715_v13 = vpop.permute.xlu0 %1714  ;;  %v1739_v18 = vpop.permute.xlu1 %1738 }
 0x8f7   : > { %1855 = vmatpush1.bf16.msra.mxu1 %v1739_v18  ;;  %v1741_v19 = vsel %vm440_vm8, %v1737_v42, %v1739_v18 }
 0x8f8   : > { %1813 = vmatprep.subr.bf16.mxu0 %v1741_v19  ;;  %1856 = vmatprep.subr.bf16.mxu1 %v2099_v15 }
 0x8f9   : > { %1814 = vmatpush1.bf16.msra.mxu0 %v1740_v52 }
 0x8fa   : > { %v1728_v4 = vpop.permute.xlu0 %1727  ;;  %v1724_v7 = vpop.permute.xlu1 %1723 }
 0x8fb   : > { %v1729_v2 = vsel %vm431_vm9, %v1724_v7, %v1726_v60  ;;  %1857 = vmatpush1.bf16.msra.mxu1 %v1728_v4  ;;  %v1730_v51 = vsel %vm431_vm9, %v1726_v60, %v1728_v4 }
 0x8fc   : > { %1815 = vmatprep.subr.bf16.mxu0 %v1730_v51  ;;  %1858 = vmatprep.subr.bf16.mxu1 %v2099_v15 }
 0x8fd   : > { %1816 = vmatpush1.bf16.msra.mxu0 %v1729_v2 }
 0x8fe   : > { %v1713_v23 = vpop.permute.xlu0 %1712  ;;  %v1717_v8 = vpop.permute.xlu1 %1716 }
 0x8ff   : > { %v1718_v20 = vsel %vm422_vm10, %v1713_v23, %v1715_v13  ;;  %1859 = vmatpush1.bf16.msra.mxu1 %v1717_v8  ;;  %v1719_v24 = vsel %vm422_vm10, %v1715_v13, %v1717_v8 }
 0x900   : > { %1817 = vmatprep.subr.bf16.mxu0 %v1719_v24  ;;  %1860 = vmatprep.subr.bf16.mxu1 %v2099_v15 }
 0x901   : > { %1818 = vmatpush1.bf16.msra.mxu0 %v1718_v20 }
 0x902   : > { %v1706_v17 = vpop.permute.xlu0 %1705  ;;  %v1704_v58 = vpop.permute.xlu1 %1703 }
 0x903   : > { %1861 = vmatpush1.bf16.msra.mxu1 %v1706_v17  ;;  %v1708_v62 = vsel %vm413_vm11, %v1704_v58, %v1706_v17 }
 0x904   : > { %1819 = vmatprep.subr.bf16.mxu0 %v1708_v62  ;;  %1862 = vmatprep.subr.bf16.mxu1 %v2099_v15 }
 0x906   : > { %v1781_v5 = vpop.permute.xlu0 %1780  ;;  %v1702_v53 = vpop.permute.xlu1 %1701 }
 0x907   : > { %v1707_v6 = vsel %vm413_vm11, %v1702_v53, %v1704_v58  ;;  %1863 = vmatpush1.bf16.msra.mxu1 %v2844_v36 }
 0x908   : > { %1820 = vmatpush1.bf16.msra.mxu0 %v1707_v6  ;;  %1878 = vmatprep.subr.bf16.mxu1 %v2099_v15 }
 0x909   : > { %1821 = vmatprep.subr.bf16.mxu0 %v2833_v32 }
 0x90a   : > { %v1783_v25 = vpop.permute.xlu1 %1782  ;;  %v1779_v26 = vpop.permute.xlu0 %1778 }
 0x90b   : > { %1879 = vmatpush2.bf16.msra.mxu1 %v1783_v25  ;;  %v1785_v3 = vsel %vm476_vm3, %v1781_v5, %v1783_v25  ;;  %v1784_v22 = vsel %vm476_vm3, %v1779_v26, %v1781_v5 }
 0x90c   : > { %2000 = vmatpush1.bf16.msk.msra.mxu0 %vm2420_vm4, %v2825_v30 }
 0x90d   : > { %1837 = vmatprep.subr.bf16.mxu0 %v1785_v3 }
 0x90e   : > { %1881 = vmatmul.mubr.bf16.vlgmr.msra.gmra.mxu1 %v2540_v1 }
 0x910   : > { %1838 = vmatpush2.bf16.msra.mxu0 %v1784_v22 }
 0x913   : > { %1840 = vmatmul.mubr.bf16.vlgmr.msra.gmra.mxu0 %v2540_v1 }
 0x917   : > { %v1044_v15 = vpop.permute.xlu1 %1043 }
 0x918   : > { %v1094_v27 = vadd.f32 %v2701_v49, %v1044_v15  ;;  %v1096_v10 = vadd.f32 %v2703_v16, %v1044_v15  ;;  %v1135_v9 = vadd.f32 %v2699_v56, %v1044_v15  ;;  %v1792_v49 = vpop.permute.xlu0 %1791 }
 0x91a   : > { %v1140_v50 = vmul.f32 %v1094_v27, %v2303_v34  ;;  %v1141_v28 = vmul.f32 %v1096_v10, %v2307_v41  ;;  %v1142_v11 = vmul.f32 %v1135_v9, %v2311_v48 }
 0x91c   : > { %v1145_v1 = vcombine.low %v1140_v50, %v1141_v28  ;;  %1149 = vst.msk [vmem:[%s368_s28 + $0x8] sm:$0xf] %vm1148_vm0, %v1142_v11 }
 0x91e   : > { %1147 = vst [vmem:[%s368_s28] sm:$0xff] %v1145_v1 }
 0x9ce   : > { %v1882_v29 = vpop.f32.mrf.mxu1 }
 0x9cf   : > { %v1883_v16 = vadd.f32 %v1882_v29, %v1792_v49 }
 0x9d0   : > { %v1884_v59 = vpop.f32.mrf.mxu1 }
 0x9d1   : > { %v1890_v56 = vmul.f32 %v1883_v16, %v2311_v48 }
 0x9d2   : > { %v1885_v30 = vpop.f32.mrf.mxu1 }
 0x9d3   : > { %2004 = vst.msk [vmem:[%s368_s28 + $0x14] sm:$0xf] %vm1148_vm0, %v1890_v56  ;;  %v1841_v31 = vpop.f32.mrf.mxu0 }
 0x9d4   : > { %v1842_v32 = vadd.f32 %v1841_v31, %v1792_v49  ;;  %v1886_v35 = vpop.f32.mrf.mxu1 }
 0x9d5   : > { %v1843_v33 = vpop.f32.mrf.mxu0 }
 0x9d6   : > { %v1844_v36 = vadd.f32 %v1843_v33, %v1792_v49  ;;  %v1888_v14 = vmul.f32 %v1842_v32, %v2303_v34 }
 0x9d7   : > { %v1845_v37 = vpop.f32.mrf.mxu0 }
 0x9d8   : > { %v1889_v38 = vmul.f32 %v1844_v36, %v2307_v41 }
 0x9d9   : > { %v1846_v39 = vpop.f32.mrf.mxu0 }
 0x9da   : > { %v1893_v12 = vcombine.low %v1888_v14, %v1889_v38 }
 0x9dc   : > { %2003 = vst [vmem:[%s368_s28 + $0xc] sm:$0xff] %v1893_v12 }
 0x9dd PF: > { %s22_s17 = sadd.s32 1, %s2087_s17  }
 0x9de   : > { %p19_p4 = scmp.ge.s32.totalorder %s22_s17, 6  }
 0x9e0   :  { %21 = sbr.rel (!%p19_p4) target bundleno = 3 (0x3), region = 92 }

</bundles_post_ra>
